<compile_context>
chip_gen: v5e
topology: v5e:2x2
jax: 0.10.0
libtpu: 0.0.40
codegen_flags: <defaults>
</compile_context>

<pallas_src>
import functools

import jax
import jax.numpy as jnp
from jax import lax
from jax.experimental import pallas as pl
from jax.experimental.pallas import tpu as pltpu

CONV_OUT = 16  # nn.Conv2d(C, 16, 3)


def agent_kernel(
    # per-batch-tile inputs
    cf_ref, par_ref, hebb_ref,
    # encoder FC
    wfc_ref, bfc_ref,
    # fused hidden1
    wh1_ref, bh1_ref,
    # ModulatedPlasticDense (flat-hebb form)
    wpl_ref, wplb_ref, m2h_ref, xbias_ref, sapl_ref, tsel_ref,
    lng_ref, lnb_ref,
    # fused heads [actor|critic|modulator] + modfanout
    whd_ref, bhd_ref, wfan_ref, bfan_ref,
    # outputs
    heads_ref, hebb_out_ref,
    *, action_size, clip_val, ln_eps):
  f32 = jnp.float32
  bf16 = jnp.bfloat16

  # ---- encoder FC: one fused bf16 MXU matmul (f32 accumulate) + ReLU -------
  feat = jnp.dot(cf_ref[...], wfc_ref[...], preferred_element_type=f32)
  feat = jnp.maximum(feat + bfc_ref[...], 0.0)                       # (TB, F)

  # ---- hidden1: ONE bf16 matmul on cat([feat, prev_action, prev_reward]) ---
  xin = jnp.concatenate([feat.astype(bf16), par_ref[...]], axis=1)   # (TB, F+A+1)
  h1 = jnp.tanh(jnp.dot(xin, wh1_ref[...], preferred_element_type=f32)
                + bh1_ref[...])                                      # (TB, hid)

  # ---- ModulatedPlasticDense on the lane-flat hebb layout ------------------
  # hebb is one flat row per sample: slot i*hid + j  <->  hebb[i, j].
  hebb = hebb_ref[...].astype(f32)                                   # (TB, W)

  # xb[b, i*hid+j] = x_pad[b, i]: built with a 0/1-selector MXU matmul plus a
  # constant for the bias row (no lane->sublane relayout, no diag-mask temp).
  xb = (jnp.dot(h1.astype(bf16), m2h_ref[...], preferred_element_type=f32)
        + xbias_ref[...])                                            # (TB, W)

  # pre = x_pad @ wpl  +  sum_i x_pad[i] * alpha[i,:] * hebb[i,:]
  pre = (jnp.dot(h1, wpl_ref[...], preferred_element_type=f32) + wplb_ref[...]
         + jnp.dot(xb * hebb, sapl_ref[...], preferred_element_type=f32))

  # LayerNorm (biased var, eps inside rsqrt, affine) + tanh
  mu = jnp.mean(pre, axis=1, keepdims=True)
  var = jnp.mean(jnp.square(pre - mu), axis=1, keepdims=True)
  y = jnp.tanh((pre - mu) * lax.rsqrt(var + ln_eps)
               * lng_ref[...] + lnb_ref[...])                        # (TB, hid)

  # ---- fused heads: [actor | critic | modulator] in one lane-dense matmul --
  raw = (jnp.dot(y.astype(bf16), whd_ref[...], preferred_element_type=f32)
         + bhd_ref[...])                                             # (TB, 128)
  lane = lax.broadcasted_iota(jnp.int32, raw.shape, 1)
  act = lane < action_size
  logits = jnp.where(act, raw, -jnp.inf)
  e = jnp.exp(logits - jnp.max(logits, axis=1, keepdims=True))
  probs = e / jnp.sum(e, axis=1, keepdims=True)      # exact divide: sums to 1
  traw = jnp.tanh(raw)
  m = jnp.sum(jnp.where(lane == action_size + 1, traw, 0.0),
              axis=1, keepdims=True)                                 # (TB, 1)

  # packed, lane-dense output block: [probs | value | m | zeros]
  heads_ref[...] = jnp.where(
      act, probs,
      jnp.where(lane == action_size, raw,
                jnp.where(lane == action_size + 1, traw, 0.0)))

  # ---- Hebbian update: delta[b, i*hid+j] = x_pad[b,i] * (eta*y)[b,j] -------
  ey = (m * wfan_ref[...] + bfan_ref[...]) * y                       # (TB, hid)
  eyt = jnp.dot(ey.astype(bf16), tsel_ref[...], preferred_element_type=f32)
  # TODO(synk): pltpu.stochastic_round for an unbiased bf16 writeback.
  hebb_out_ref[...] = jnp.clip(hebb + xb * eyt, -clip_val, clip_val
                               ).astype(hebb_out_ref.dtype)


def init_params(key, obs_shape, feature_size, hidden_size, action_size):
  C, H, W = obs_shape
  hw = (H - 2) * (W - 2)
  ks = jax.random.split(key, 16)

  def nrm(k, shape, std=0.05):
    return (std * jax.random.normal(k, shape)).astype(jnp.float32)

  return dict(
      # Conv2d(C, 16, 3): PyTorch OIHW layout, used by lax.conv in the glue.
      wconv=nrm(ks[0], (CONV_OUT, C, 3, 3)),
      bconv=nrm(ks[1], (CONV_OUT,)),
      # Linear(16*(H-2)*(W-2), F): stored (in, out) in NCHW-flatten order,
      # bf16 for the fused MXU matmul (f32 accumulation in-kernel).
      wfc=nrm(ks[2], (CONV_OUT * hw, feature_size)).astype(jnp.bfloat16),
      bfc=nrm(ks[3], (1, feature_size)),
      # hidden1: Linear(F + A + 1, hidden), split along the input axis.
      wh1f=nrm(ks[4], (feature_size, hidden_size)),
      wh1a=nrm(ks[5], (action_size, hidden_size)),
      wh1r=nrm(ks[6], (1, hidden_size)),
      bh1=nrm(ks[7], (1, hidden_size)),
      # ModulatedPlasticDense: weight/alpha are (hidden+1, hidden), std=0.001.
      wpl=nrm(ks[8], (hidden_size + 1, hidden_size), 0.001),
      apl=nrm(ks[9], (hidden_size + 1, hidden_size), 0.001),
      ln_g=jnp.ones((1, hidden_size), jnp.float32),
      ln_b=jnp.zeros((1, hidden_size), jnp.float32),
      wmod=nrm(ks[10], (1, hidden_size)),      # modulator.weight (1, hid)
      bmod=jnp.zeros((1, 1), jnp.float32),
      wfan=nrm(ks[11], (1, hidden_size)),      # modfanout.weight.T (1, hid)
      bfan=jnp.zeros((1, hidden_size), jnp.float32),
      wact=nrm(ks[12], (hidden_size, action_size)),
      bact=jnp.zeros((1, action_size), jnp.float32),
      wcrit=nrm(ks[13], (1, hidden_size)),     # critic.weight (1, hid)
      bcrit=jnp.zeros((1, 1), jnp.float32),
  )


def _pick_tb(batch, flat_w):
  """Batch-tile size: keep the hebb working set ~<=16 MiB of VMEM (v7x only
  has 64 MiB), force >=2 grid steps when B >= 16 so the 'parallel' axis can
  use both v7x TensorCores, and prefer a tile that divides B (no padding)."""
  per_sample = flat_w * (2 * 2 * 2 + 6 * 4)   # dbl-buffered bf16 in/out + f32 temps
  cap = max(1, min(256, (16 << 20) // max(per_sample, 1)))
  if batch >= 16:
    cap = max(8, min(cap, batch // 2))
  cap = min(cap, batch)
  for tb in range(cap, 0, -1):                # largest tile that divides B
    if batch % tb == 0 and (tb % 8 == 0 or tb == batch):
      return tb
  return max(8, (cap // 8) * 8)               # fall back to padding


def forward(params, obs, prev_action, prev_reward, hebb=None):
  B, C, H, W_img = obs.shape
  hw = (H - 2) * (W_img - 2)
  A = prev_action.shape[1]
  hid = params["wh1f"].shape[1]
  hid1 = hid + 1
  Wf = hid1 * hid                     # flat hebb width (free reshape, no repack)
  headw = -(-(A + 2) // 128) * 128    # lane-dense packed [probs | value | m | 0]
  f32, bf16 = jnp.float32, jnp.bfloat16

  # ---- XLA glue: 3x3 conv + ReLU + NCHW flatten ----------------------------
  # TODO(synk): pull the conv itself into the Pallas kernel (needs an
  # in-kernel minor-dim flatten of the conv activation).
  conv = lax.conv_general_dilated(
      obs.astype(f32), params["wconv"], (1, 1), "VALID",
      dimension_numbers=("NCHW", "OIHW", "NCHW"))
  conv = jnp.maximum(conv + params["bconv"][None, :, None, None], 0.0)
  conv_flat = conv.reshape(B, CONV_OUT * hw).astype(bf16)

  par = jnp.concatenate(
      [prev_action.reshape(B, A).astype(f32),
       prev_reward.reshape(B, 1).astype(f32)], axis=1).astype(bf16)

  if hebb is None:
    hebb_flat = jnp.zeros((B, Wf), bf16)
  else:
    hebb_flat = hebb.reshape(B, Wf).astype(bf16)   # free view when already bf16

  # ---- kernel-ready fused weights & flat-hebb selectors --------------------
  # (cheap; in a rollout loop these should be built once and reused)
  wh1 = jnp.concatenate(
      [params["wh1f"], params["wh1a"], params["wh1r"]], axis=0).astype(bf16)
  wpl_main = params["wpl"][:hid].astype(f32)          # (hid, hid)
  wpl_bias = params["wpl"][hid:hid + 1].astype(f32)   # (1, hid)

  fi = jnp.arange(Wf)
  rows, cols = fi // hid, fi % hid
  m2h = (rows[None, :] == jnp.arange(hid)[:, None]).astype(bf16)     # (hid, Wf)
  xbias = (rows == hid).astype(f32)[None, :]                         # (1, Wf)
  s_apl = jnp.where(cols[:, None] == jnp.arange(hid)[None, :],
                    params["apl"].reshape(Wf, 1), 0.0).astype(f32)   # (Wf, hid)
  tsel = (cols[None, :] == jnp.arange(hid)[:, None]).astype(bf16)    # (hid, Wf)

  wheads = jnp.zeros((hid, headw), f32)
  wheads = wheads.at[:, :A].set(params["wact"])
  wheads = wheads.at[:, A].set(params["wcrit"][0])
  wheads = wheads.at[:, A + 1].set(params["wmod"][0])
  wheads = wheads.astype(bf16)
  bheads = jnp.zeros((1, headw), f32)
  bheads = bheads.at[0, :A].set(params["bact"][0])
  bheads = bheads.at[0, A].set(params["bcrit"][0, 0])
  bheads = bheads.at[0, A + 1].set(params["bmod"][0, 0])

  weights = [params["wfc"].astype(bf16), params["bfc"],
             wh1, params["bh1"],
             wpl_main, wpl_bias, m2h, xbias, s_apl, tsel,
             params["ln_g"], params["ln_b"],
             wheads, bheads, params["wfan"], params["bfan"]]

  # ---- batch tiling --------------------------------------------------------
  TB = _pick_tb(B, Wf)
  nb = -(-B // TB)
  B_pad = nb * TB
  if B_pad != B:
    pw = B_pad - B
    conv_flat = jnp.pad(conv_flat, ((0, pw), (0, 0)))
    par = jnp.pad(par, ((0, pw), (0, 0)))
    hebb_flat = jnp.pad(hebb_flat, ((0, pw), (0, 0)))

  def tile_spec(x):
    return pl.BlockSpec((TB, x.shape[1]), lambda b: (b, 0))

  def full_spec(x):
    return pl.BlockSpec(x.shape, lambda b: (0, 0))

  in_specs = ([tile_spec(conv_flat), tile_spec(par), tile_spec(hebb_flat)]
              + [full_spec(w) for w in weights])
  out_specs = (pl.BlockSpec((TB, headw), lambda b: (b, 0)),
               pl.BlockSpec((TB, Wf), lambda b: (b, 0)))
  out_shape = (jax.ShapeDtypeStruct((B_pad, headw), f32),
               jax.ShapeDtypeStruct((B_pad, Wf), bf16))

  # VMEM budget: actual need + headroom, capped at 48 MiB (v7x has only 64 MiB
  # physical per TensorCore; never request all of it).
  est = (TB * Wf * (2 * 2 * 2 + 6 * 4)
         + sum(int(w.size) * w.dtype.itemsize for w in weights)
         + 2 * TB * (conv_flat.shape[1] * 2 + headw * 4 + (A + 1) * 2))
  vmem_limit = int(min(48 << 20, max(24 << 20, 2 * est)))

  kernel = functools.partial(agent_kernel, action_size=A,
                             clip_val=2.0, ln_eps=1e-5)

  heads, hebb_new = pl.pallas_call(
      kernel,
      out_shape=out_shape,
      grid=(nb,),
      in_specs=in_specs,
      out_specs=out_specs,
      input_output_aliases={2: 1},      # hebb in -> hebb out (same shape/dtype)
      compiler_params=pltpu.CompilerParams(
          dimension_semantics=("parallel",),
          vmem_limit_bytes=vmem_limit),
  )(conv_flat, par, hebb_flat, *weights)

  heads = heads[:B]
  probs = heads[:, :A]
  value = heads[:, A:A + 1]
  m = heads[:, A + 1:A + 2]
  hebb_new = hebb_new[:B].reshape(B, hid1, hid)   # bf16 state, original layout
  # match PyTorch return signature: (action_probs, value_pred, m, None, hebb)
  return probs, value, m, None, hebb_new


def reference_forward(params, obs, prev_action, prev_reward, hebb=None):
  """Pure-JAX f32 reference of the same forward pass (for a sanity check)."""
  B = obs.shape[0]
  hid = params["wh1f"].shape[1]
  conv = lax.conv_general_dilated(
      obs.astype(jnp.float32), params["wconv"], (1, 1), "VALID",
      dimension_numbers=("NCHW", "OIHW", "NCHW"))
  conv = jnp.maximum(conv + params["bconv"][None, :, None, None], 0.0)
  cf = conv.reshape(B, -1)
  feat = jnp.maximum(cf @ params["wfc"].astype(jnp.float32) + params["bfc"], 0.0)
  h1 = jnp.tanh(feat @ params["wh1f"] + prev_action @ params["wh1a"]
                + prev_reward * params["wh1r"] + params["bh1"])
  if hebb is None:
    hebb = jnp.zeros((B, hid + 1, hid), jnp.float32)
  hebb = hebb.astype(jnp.float32)
  x_pad = jnp.concatenate([h1, jnp.ones((B, 1), jnp.float32)], axis=1)
  weff = params["wpl"][None] + params["apl"][None] * hebb
  pre = jnp.einsum("bi,bij->bj", x_pad, weff)
  mu = pre.mean(axis=1, keepdims=True)
  var = ((pre - mu) ** 2).mean(axis=1, keepdims=True)
  y = jnp.tanh((pre - mu) / jnp.sqrt(var + 1e-5) * params["ln_g"] + params["ln_b"])
  m = jnp.tanh(y @ params["wmod"].T + params["bmod"])
  eta = m * params["wfan"] + params["bfan"]
  delta = x_pad[:, :, None] * (eta * y)[:, None, :]
  hebb_new = jnp.clip(hebb + delta, -2.0, 2.0)
  probs = jax.nn.softmax(y @ params["wact"] + params["bact"], axis=1)
  value = y @ params["wcrit"].T + params["bcrit"]
  return probs, value, m, None, hebb_new


if __name__ == "__main__":
  key = jax.random.PRNGKey(0)
  B, C, H, W = 2, 4, 8, 8
  feature_size, hidden_size, action_size = 32, 32, 4

  k_par, k_obs, k_act, k_rew = jax.random.split(key, 4)
  params = init_params(k_par, (C, H, W), feature_size, hidden_size, action_size)

  obs = jax.random.normal(k_obs, (B, C, H, W), jnp.float32)
  prev_action = jax.nn.one_hot(
      jax.random.randint(k_act, (B,), 0, action_size), action_size
  ).astype(jnp.float32)
  prev_reward = jax.random.normal(k_rew, (B, 1), jnp.float32)

  # step 1: hebb = None (zeros)
  probs, value, m, _, hebb = forward(params, obs, prev_action, prev_reward,
                                     hebb=None)
  jax.block_until_ready((probs, value, m, hebb))

  assert probs.shape == (B, action_size)
  assert value.shape == (B, 1)
  assert m.shape == (B, 1)
  assert hebb.shape == (B, hidden_size + 1, hidden_size)

  rp, rv, rm, _, rh = reference_forward(params, obs, prev_action, prev_reward)
  assert bool(jnp.allclose(jnp.sum(probs, axis=1), 1.0, atol=1e-3))
  assert bool(jnp.allclose(probs, rp, atol=5e-2))
  assert bool(jnp.allclose(value, rv, atol=5e-2))
  assert bool(jnp.allclose(m, rm, atol=5e-2))
  assert bool(jnp.allclose(hebb.astype(jnp.float32), rh, atol=5e-2))

  # step 2: chained hebb state (exercises the plastic x.(alpha*hebb) path)
  probs2, value2, m2, _, hebb2 = forward(params, obs, prev_action, prev_reward,
                                         hebb=hebb)
  jax.block_until_ready((probs2, value2, m2, hebb2))
  rp2, rv2, rm2, _, rh2 = reference_forward(params, obs, prev_action,
                                            prev_reward, hebb=rh)
  assert bool(jnp.allclose(jnp.sum(probs2, axis=1), 1.0, atol=1e-3))
  assert bool(jnp.allclose(probs2, rp2, atol=5e-2))
  assert bool(jnp.allclose(value2, rv2, atol=5e-2))
  assert bool(jnp.allclose(m2, rm2, atol=5e-2))
  assert bool(jnp.allclose(hebb2.astype(jnp.float32), rh2, atol=5e-2))

  print("KERNEL_OK")
</pallas_src>

<mosaic_0001>
module attributes {stable_mosaic.version = 11 : i64} {
  func.func @agent_kernel(%arg0: i32, %arg1: memref<2x576xbf16, #tpu.memory_space<vmem>>, %arg2: memref<2x5xbf16, #tpu.memory_space<vmem>>, %arg3: memref<2x1056xbf16, #tpu.memory_space<vmem>>, %arg4: memref<576x32xbf16, #tpu.memory_space<vmem>>, %arg5: memref<1x32xf32, #tpu.memory_space<vmem>>, %arg6: memref<37x32xbf16, #tpu.memory_space<vmem>>, %arg7: memref<1x32xf32, #tpu.memory_space<vmem>>, %arg8: memref<32x32xf32, #tpu.memory_space<vmem>>, %arg9: memref<1x32xf32, #tpu.memory_space<vmem>>, %arg10: memref<32x1056xbf16, #tpu.memory_space<vmem>>, %arg11: memref<1x1056xf32, #tpu.memory_space<vmem>>, %arg12: memref<1056x32xf32, #tpu.memory_space<vmem>>, %arg13: memref<32x1056xbf16, #tpu.memory_space<vmem>>, %arg14: memref<1x32xf32, #tpu.memory_space<vmem>>, %arg15: memref<1x32xf32, #tpu.memory_space<vmem>>, %arg16: memref<32x128xbf16, #tpu.memory_space<vmem>>, %arg17: memref<1x128xf32, #tpu.memory_space<vmem>>, %arg18: memref<1x32xf32, #tpu.memory_space<vmem>>, %arg19: memref<1x32xf32, #tpu.memory_space<vmem>>, %arg20: memref<2x128xf32, #tpu.memory_space<vmem>>, %arg21: memref<2x1056xbf16, #tpu.memory_space<vmem>>) attributes {dimension_semantics = [#tpu.dimension_semantics<parallel>], iteration_bounds = array<i64: 1>, scalar_prefetch = 0 : i64, scratch_operands = 0 : i64, tpu.core_type = #tpu.core_type<tc>, window_params = [{transform_indices = @transform_0, window_bounds = array<i64: 2, 576>}, {transform_indices = @transform_1, window_bounds = array<i64: 2, 5>}, {transform_indices = @transform_2, window_bounds = array<i64: 2, 1056>}, {pipeline_mode = #tpu.pipeline_mode<synchronous>, transform_indices = @transform_3, window_bounds = array<i64: 576, 32>}, {pipeline_mode = #tpu.pipeline_mode<synchronous>, transform_indices = @transform_4, window_bounds = array<i64: 1, 32>}, {pipeline_mode = #tpu.pipeline_mode<synchronous>, transform_indices = @transform_5, window_bounds = array<i64: 37, 32>}, {pipeline_mode = #tpu.pipeline_mode<synchronous>, transform_indices = @transform_6, window_bounds = array<i64: 1, 32>}, {pipeline_mode = #tpu.pipeline_mode<synchronous>, transform_indices = @transform_7, window_bounds = array<i64: 32, 32>}, {pipeline_mode = #tpu.pipeline_mode<synchronous>, transform_indices = @transform_8, window_bounds = array<i64: 1, 32>}, {pipeline_mode = #tpu.pipeline_mode<synchronous>, transform_indices = @transform_9, window_bounds = array<i64: 32, 1056>}, {pipeline_mode = #tpu.pipeline_mode<synchronous>, transform_indices = @transform_10, window_bounds = array<i64: 1, 1056>}, {pipeline_mode = #tpu.pipeline_mode<synchronous>, transform_indices = @transform_11, window_bounds = array<i64: 1056, 32>}, {pipeline_mode = #tpu.pipeline_mode<synchronous>, transform_indices = @transform_12, window_bounds = array<i64: 32, 1056>}, {pipeline_mode = #tpu.pipeline_mode<synchronous>, transform_indices = @transform_13, window_bounds = array<i64: 1, 32>}, {pipeline_mode = #tpu.pipeline_mode<synchronous>, transform_indices = @transform_14, window_bounds = array<i64: 1, 32>}, {pipeline_mode = #tpu.pipeline_mode<synchronous>, transform_indices = @transform_15, window_bounds = array<i64: 32, 128>}, {pipeline_mode = #tpu.pipeline_mode<synchronous>, transform_indices = @transform_16, window_bounds = array<i64: 1, 128>}, {pipeline_mode = #tpu.pipeline_mode<synchronous>, transform_indices = @transform_17, window_bounds = array<i64: 1, 32>}, {pipeline_mode = #tpu.pipeline_mode<synchronous>, transform_indices = @transform_18, window_bounds = array<i64: 1, 32>}, {transform_indices = @transform_19, window_bounds = array<i64: 2, 128>}, {transform_indices = @transform_20, window_bounds = array<i64: 2, 1056>}]} {
    %c0 = arith.constant 0 : index
    %c0_0 = arith.constant 0 : index
    %0 = vector.load %arg1[%c0, %c0_0] : memref<2x576xbf16, #tpu.memory_space<vmem>>, vector<2x576xbf16>
    %c0_1 = arith.constant 0 : index
    %c0_2 = arith.constant 0 : index
    %1 = vector.load %arg4[%c0_1, %c0_2] : memref<576x32xbf16, #tpu.memory_space<vmem>>, vector<576x32xbf16>
    %cst = arith.constant dense<0.000000e+00> : vector<2x32xf32>
    %2 = tpu.matmul %0, %1, %cst {dimension_numbers = #tpu.dot_dimension_numbers<[1], [0], [0], [1], [0, 0, 1, 1], [], []>} : vector<2x576xbf16>, vector<576x32xbf16>, vector<2x32xf32> -> vector<2x32xf32>
    %c0_3 = arith.constant 0 : index
    %c0_4 = arith.constant 0 : index
    %3 = vector.load %arg5[%c0_3, %c0_4] : memref<1x32xf32, #tpu.memory_space<vmem>>, vector<1x32xf32>
    %4 = vector.broadcast %3 : vector<1x32xf32> to vector<2x32xf32>
    %5 = arith.addf %2, %4 : vector<2x32xf32>
    %cst_5 = arith.constant 0.000000e+00 : f32
    %6 = vector.broadcast %cst_5 : f32 to vector<2x32xf32>
    %7 = arith.maximumf %5, %6 : vector<2x32xf32>
    %8 = arith.truncf %7 : vector<2x32xf32> to vector<2x32xbf16>
    %c0_6 = arith.constant 0 : index
    %c0_7 = arith.constant 0 : index
    %9 = vector.load %arg2[%c0_6, %c0_7] : memref<2x5xbf16, #tpu.memory_space<vmem>>, vector<2x5xbf16>
    %10 = tpu.concatenate %8, %9 in 1 : vector<2x32xbf16>, vector<2x5xbf16> -> vector<2x37xbf16>
    %c0_8 = arith.constant 0 : index
    %c0_9 = arith.constant 0 : index
    %11 = vector.load %arg6[%c0_8, %c0_9] : memref<37x32xbf16, #tpu.memory_space<vmem>>, vector<37x32xbf16>
    %cst_10 = arith.constant dense<0.000000e+00> : vector<2x32xf32>
    %12 = tpu.matmul %10, %11, %cst_10 {dimension_numbers = #tpu.dot_dimension_numbers<[1], [0], [0], [1], [0, 0, 1, 1], [], []>} : vector<2x37xbf16>, vector<37x32xbf16>, vector<2x32xf32> -> vector<2x32xf32>
    %c0_11 = arith.constant 0 : index
    %c0_12 = arith.constant 0 : index
    %13 = vector.load %arg7[%c0_11, %c0_12] : memref<1x32xf32, #tpu.memory_space<vmem>>, vector<1x32xf32>
    %14 = vector.broadcast %13 : vector<1x32xf32> to vector<2x32xf32>
    %15 = arith.addf %12, %14 : vector<2x32xf32>
    %16 = math.tanh %15 : vector<2x32xf32>
    %c0_13 = arith.constant 0 : index
    %c0_14 = arith.constant 0 : index
    %17 = vector.load %arg3[%c0_13, %c0_14] : memref<2x1056xbf16, #tpu.memory_space<vmem>>, vector<2x1056xbf16>
    %18 = arith.extf %17 : vector<2x1056xbf16> to vector<2x1056xf32>
    %19 = arith.truncf %16 : vector<2x32xf32> to vector<2x32xbf16>
    %c0_15 = arith.constant 0 : index
    %c0_16 = arith.constant 0 : index
    %20 = vector.load %arg10[%c0_15, %c0_16] : memref<32x1056xbf16, #tpu.memory_space<vmem>>, vector<32x1056xbf16>
    %cst_17 = arith.constant dense<0.000000e+00> : vector<2x1056xf32>
    %21 = tpu.matmul %19, %20, %cst_17 {dimension_numbers = #tpu.dot_dimension_numbers<[1], [0], [0], [1], [0, 0, 1, 1], [], []>} : vector<2x32xbf16>, vector<32x1056xbf16>, vector<2x1056xf32> -> vector<2x1056xf32>
    %c0_18 = arith.constant 0 : index
    %c0_19 = arith.constant 0 : index
    %22 = vector.load %arg11[%c0_18, %c0_19] : memref<1x1056xf32, #tpu.memory_space<vmem>>, vector<1x1056xf32>
    %23 = vector.broadcast %22 : vector<1x1056xf32> to vector<2x1056xf32>
    %24 = arith.addf %21, %23 : vector<2x1056xf32>
    %c0_20 = arith.constant 0 : index
    %c0_21 = arith.constant 0 : index
    %25 = vector.load %arg8[%c0_20, %c0_21] : memref<32x32xf32, #tpu.memory_space<vmem>>, vector<32x32xf32>
    %cst_22 = arith.constant dense<0.000000e+00> : vector<2x32xf32>
    %26 = tpu.matmul %16, %25, %cst_22 {dimension_numbers = #tpu.dot_dimension_numbers<[1], [0], [0], [1], [0, 0, 1, 1], [], []>} : vector<2x32xf32>, vector<32x32xf32>, vector<2x32xf32> -> vector<2x32xf32>
    %c0_23 = arith.constant 0 : index
    %c0_24 = arith.constant 0 : index
    %27 = vector.load %arg9[%c0_23, %c0_24] : memref<1x32xf32, #tpu.memory_space<vmem>>, vector<1x32xf32>
    %28 = vector.broadcast %27 : vector<1x32xf32> to vector<2x32xf32>
    %29 = arith.addf %26, %28 : vector<2x32xf32>
    %30 = arith.mulf %24, %18 : vector<2x1056xf32>
    %c0_25 = arith.constant 0 : index
    %c0_26 = arith.constant 0 : index
    %31 = vector.load %arg12[%c0_25, %c0_26] : memref<1056x32xf32, #tpu.memory_space<vmem>>, vector<1056x32xf32>
    %cst_27 = arith.constant dense<0.000000e+00> : vector<2x32xf32>
    %32 = tpu.matmul %30, %31, %cst_27 {dimension_numbers = #tpu.dot_dimension_numbers<[1], [0], [0], [1], [0, 0, 1, 1], [], []>} : vector<2x1056xf32>, vector<1056x32xf32>, vector<2x32xf32> -> vector<2x32xf32>
    %33 = arith.addf %29, %32 : vector<2x32xf32>
    %cst_28 = arith.constant dense<0.000000e+00> : vector<2xf32>
    %34 = vector.multi_reduction <add>, %33, %cst_28 [1] : vector<2x32xf32> to vector<2xf32>
    %35 = vector.shape_cast %34 : vector<2xf32> to vector<2x1xf32>
    %cst_29 = arith.constant 3.200000e+01 : f32
    %36 = vector.broadcast %cst_29 : f32 to vector<2x1xf32>
    %37 = arith.divf %35, %36 : vector<2x1xf32>
    %38 = vector.broadcast %37 : vector<2x1xf32> to vector<2x32xf32>
    %39 = arith.subf %33, %38 : vector<2x32xf32>
    %40 = arith.mulf %39, %39 : vector<2x32xf32>
    %cst_30 = arith.constant dense<0.000000e+00> : vector<2xf32>
    %41 = vector.multi_reduction <add>, %40, %cst_30 [1] : vector<2x32xf32> to vector<2xf32>
    %42 = vector.shape_cast %41 : vector<2xf32> to vector<2x1xf32>
    %cst_31 = arith.constant 3.200000e+01 : f32
    %43 = vector.broadcast %cst_31 : f32 to vector<2x1xf32>
    %44 = arith.divf %42, %43 : vector<2x1xf32>
    %45 = vector.broadcast %37 : vector<2x1xf32> to vector<2x32xf32>
    %46 = arith.subf %33, %45 : vector<2x32xf32>
    %cst_32 = arith.constant 9.99999974E-6 : f32
    %47 = vector.broadcast %cst_32 : f32 to vector<2x1xf32>
    %48 = arith.addf %44, %47 : vector<2x1xf32>
    %49 = math.rsqrt %48 : vector<2x1xf32>
    %50 = vector.broadcast %49 : vector<2x1xf32> to vector<2x32xf32>
    %51 = arith.mulf %46, %50 : vector<2x32xf32>
    %c0_33 = arith.constant 0 : index
    %c0_34 = arith.constant 0 : index
    %52 = vector.load %arg14[%c0_33, %c0_34] : memref<1x32xf32, #tpu.memory_space<vmem>>, vector<1x32xf32>
    %53 = vector.broadcast %52 : vector<1x32xf32> to vector<2x32xf32>
    %54 = arith.mulf %51, %53 : vector<2x32xf32>
    %c0_35 = arith.constant 0 : index
    %c0_36 = arith.constant 0 : index
    %55 = vector.load %arg15[%c0_35, %c0_36] : memref<1x32xf32, #tpu.memory_space<vmem>>, vector<1x32xf32>
    %56 = vector.broadcast %55 : vector<1x32xf32> to vector<2x32xf32>
    %57 = arith.addf %54, %56 : vector<2x32xf32>
    %58 = math.tanh %57 : vector<2x32xf32>
    %59 = arith.truncf %58 : vector<2x32xf32> to vector<2x32xbf16>
    %c0_37 = arith.constant 0 : index
    %c0_38 = arith.constant 0 : index
    %60 = vector.load %arg16[%c0_37, %c0_38] : memref<32x128xbf16, #tpu.memory_space<vmem>>, vector<32x128xbf16>
    %cst_39 = arith.constant dense<0.000000e+00> : vector<2x128xf32>
    %61 = tpu.matmul %59, %60, %cst_39 {dimension_numbers = #tpu.dot_dimension_numbers<[1], [0], [0], [1], [0, 0, 1, 1], [], []>} : vector<2x32xbf16>, vector<32x128xbf16>, vector<2x128xf32> -> vector<2x128xf32>
    %c0_40 = arith.constant 0 : index
    %c0_41 = arith.constant 0 : index
    %62 = vector.load %arg17[%c0_40, %c0_41] : memref<1x128xf32, #tpu.memory_space<vmem>>, vector<1x128xf32>
    %63 = vector.broadcast %62 : vector<1x128xf32> to vector<2x128xf32>
    %64 = arith.addf %61, %63 : vector<2x128xf32>
    %65 = tpu.iota {dimensions = array<i32: 1>} : vector<2x128xi32>
    %c4_i32 = arith.constant 4 : i32
    %66 = vector.broadcast %c4_i32 : i32 to vector<2x128xi32>
    %67 = arith.cmpi slt, %65, %66 : vector<2x128xi32>
    %cst_42 = arith.constant 0xFF800000 : f32
    %68 = vector.broadcast %cst_42 : f32 to vector<2x128xf32>
    %69 = arith.select %67, %64, %68 : vector<2x128xi1>, vector<2x128xf32>
    %cst_43 = arith.constant dense<0xFF800000> : vector<2xf32>
    %70 = vector.multi_reduction <maximumf>, %69, %cst_43 [1] : vector<2x128xf32> to vector<2xf32>
    %71 = vector.shape_cast %70 : vector<2xf32> to vector<2x1xf32>
    %72 = vector.broadcast %71 : vector<2x1xf32> to vector<2x128xf32>
    %73 = arith.subf %69, %72 : vector<2x128xf32>
    %74 = math.exp %73 : vector<2x128xf32>
    %cst_44 = arith.constant dense<0.000000e+00> : vector<2xf32>
    %75 = vector.multi_reduction <add>, %74, %cst_44 [1] : vector<2x128xf32> to vector<2xf32>
    %76 = vector.shape_cast %75 : vector<2xf32> to vector<2x1xf32>
    %77 = vector.broadcast %76 : vector<2x1xf32> to vector<2x128xf32>
    %78 = arith.divf %74, %77 : vector<2x128xf32>
    %79 = math.tanh %64 : vector<2x128xf32>
    %c5_i32 = arith.constant 5 : i32
    %80 = vector.broadcast %c5_i32 : i32 to vector<2x128xi32>
    %81 = arith.cmpi eq, %65, %80 : vector<2x128xi32>
    %cst_45 = arith.constant 0.000000e+00 : f32
    %82 = vector.broadcast %cst_45 : f32 to vector<2x128xf32>
    %83 = arith.select %81, %79, %82 : vector<2x128xi1>, vector<2x128xf32>
    %cst_46 = arith.constant dense<0.000000e+00> : vector<2xf32>
    %84 = vector.multi_reduction <add>, %83, %cst_46 [1] : vector<2x128xf32> to vector<2xf32>
    %85 = vector.shape_cast %84 : vector<2xf32> to vector<2x1xf32>
    %c4_i32_47 = arith.constant 4 : i32
    %86 = vector.broadcast %c4_i32_47 : i32 to vector<2x128xi32>
    %87 = arith.cmpi eq, %65, %86 : vector<2x128xi32>
    %c5_i32_48 = arith.constant 5 : i32
    %88 = vector.broadcast %c5_i32_48 : i32 to vector<2x128xi32>
    %89 = arith.cmpi eq, %65, %88 : vector<2x128xi32>
    %cst_49 = arith.constant 0.000000e+00 : f32
    %90 = vector.broadcast %cst_49 : f32 to vector<2x128xf32>
    %91 = arith.select %89, %79, %90 : vector<2x128xi1>, vector<2x128xf32>
    %92 = arith.select %87, %64, %91 : vector<2x128xi1>, vector<2x128xf32>
    %93 = arith.select %67, %78, %92 : vector<2x128xi1>, vector<2x128xf32>
    %c0_50 = arith.constant 0 : index
    %c0_51 = arith.constant 0 : index
    %94 = vector.load %arg20[%c0_50, %c0_51] : memref<2x128xf32, #tpu.memory_space<vmem>>, vector<2x128xf32>
    tpu.vector_store %arg20[%c0_50, %c0_51], %93 {strides = array<i32>} : memref<2x128xf32, #tpu.memory_space<vmem>>, vector<2x128xf32>,
    %c0_52 = arith.constant 0 : index
    %c0_53 = arith.constant 0 : index
    %95 = vector.load %arg18[%c0_52, %c0_53] : memref<1x32xf32, #tpu.memory_space<vmem>>, vector<1x32xf32>
    %96 = vector.broadcast %85 : vector<2x1xf32> to vector<2x32xf32>
    %97 = vector.broadcast %95 : vector<1x32xf32> to vector<2x32xf32>
    %98 = arith.mulf %96, %97 : vector<2x32xf32>
    %c0_54 = arith.constant 0 : index
    %c0_55 = arith.constant 0 : index
    %99 = vector.load %arg19[%c0_54, %c0_55] : memref<1x32xf32, #tpu.memory_space<vmem>>, vector<1x32xf32>
    %100 = vector.broadcast %99 : vector<1x32xf32> to vector<2x32xf32>
    %101 = arith.addf %98, %100 : vector<2x32xf32>
    %102 = arith.mulf %101, %58 : vector<2x32xf32>
    %103 = arith.truncf %102 : vector<2x32xf32> to vector<2x32xbf16>
    %c0_56 = arith.constant 0 : index
    %c0_57 = arith.constant 0 : index
    %104 = vector.load %arg13[%c0_56, %c0_57] : memref<32x1056xbf16, #tpu.memory_space<vmem>>, vector<32x1056xbf16>
    %cst_58 = arith.constant dense<0.000000e+00> : vector<2x1056xf32>
    %105 = tpu.matmul %103, %104, %cst_58 {dimension_numbers = #tpu.dot_dimension_numbers<[1], [0], [0], [1], [0, 0, 1, 1], [], []>} : vector<2x32xbf16>, vector<32x1056xbf16>, vector<2x1056xf32> -> vector<2x1056xf32>
    %106 = arith.mulf %24, %105 : vector<2x1056xf32>
    %107 = arith.addf %18, %106 : vector<2x1056xf32>
    %cst_59 = arith.constant -2.000000e+00 : f32
    %cst_60 = arith.constant 2.000000e+00 : f32
    %108 = vector.broadcast %cst_59 : f32 to vector<2x1056xf32>
    %109 = arith.maximumf %108, %107 : vector<2x1056xf32>
    %110 = vector.broadcast %cst_60 : f32 to vector<2x1056xf32>
    %111 = arith.minimumf %110, %109 : vector<2x1056xf32>
    %112 = arith.truncf %111 : vector<2x1056xf32> to vector<2x1056xbf16>
    %c0_61 = arith.constant 0 : index
    %c0_62 = arith.constant 0 : index
    %113 = vector.load %arg21[%c0_61, %c0_62] : memref<2x1056xbf16, #tpu.memory_space<vmem>>, vector<2x1056xbf16>
    tpu.vector_store %arg21[%c0_61, %c0_62], %112 {strides = array<i32>} : memref<2x1056xbf16, #tpu.memory_space<vmem>>, vector<2x1056xbf16>,
    return
  }
  func.func @transform_0(%arg0: i32) -> (i32, i32) {
    %c0_i32 = arith.constant 0 : i32
    %c0_i32_0 = arith.constant 0 : i32
    return %arg0, %c0_i32 : i32, i32
  }
  func.func @transform_1(%arg0: i32) -> (i32, i32) {
    %c0_i32 = arith.constant 0 : i32
    %c0_i32_0 = arith.constant 0 : i32
    return %arg0, %c0_i32 : i32, i32
  }
  func.func @transform_2(%arg0: i32) -> (i32, i32) {
    %c0_i32 = arith.constant 0 : i32
    %c0_i32_0 = arith.constant 0 : i32
    return %arg0, %c0_i32 : i32, i32
  }
  func.func @transform_3(%arg0: i32) -> (i32, i32) {
    %c0_i32 = arith.constant 0 : i32
    %c0_i32_0 = arith.constant 0 : i32
    %c0_i32_1 = arith.constant 0 : i32
    return %c0_i32, %c0_i32_0 : i32, i32
  }
  func.func @transform_4(%arg0: i32) -> (i32, i32) {
    %c0_i32 = arith.constant 0 : i32
    %c0_i32_0 = arith.constant 0 : i32
    %c0_i32_1 = arith.constant 0 : i32
    return %c0_i32, %c0_i32_0 : i32, i32
  }
  func.func @transform_5(%arg0: i32) -> (i32, i32) {
    %c0_i32 = arith.constant 0 : i32
    %c0_i32_0 = arith.constant 0 : i32
    %c0_i32_1 = arith.constant 0 : i32
    return %c0_i32, %c0_i32_0 : i32, i32
  }
  func.func @transform_6(%arg0: i32) -> (i32, i32) {
    %c0_i32 = arith.constant 0 : i32
    %c0_i32_0 = arith.constant 0 : i32
    %c0_i32_1 = arith.constant 0 : i32
    return %c0_i32, %c0_i32_0 : i32, i32
  }
  func.func @transform_7(%arg0: i32) -> (i32, i32) {
    %c0_i32 = arith.constant 0 : i32
    %c0_i32_0 = arith.constant 0 : i32
    %c0_i32_1 = arith.constant 0 : i32
    return %c0_i32, %c0_i32_0 : i32, i32
  }
  func.func @transform_8(%arg0: i32) -> (i32, i32) {
    %c0_i32 = arith.constant 0 : i32
    %c0_i32_0 = arith.constant 0 : i32
    %c0_i32_1 = arith.constant 0 : i32
    return %c0_i32, %c0_i32_0 : i32, i32
  }
  func.func @transform_9(%arg0: i32) -> (i32, i32) {
    %c0_i32 = arith.constant 0 : i32
    %c0_i32_0 = arith.constant 0 : i32
    %c0_i32_1 = arith.constant 0 : i32
    return %c0_i32, %c0_i32_0 : i32, i32
  }
  func.func @transform_10(%arg0: i32) -> (i32, i32) {
    %c0_i32 = arith.constant 0 : i32
    %c0_i32_0 = arith.constant 0 : i32
    %c0_i32_1 = arith.constant 0 : i32
    return %c0_i32, %c0_i32_0 : i32, i32
  }
  func.func @transform_11(%arg0: i32) -> (i32, i32) {
    %c0_i32 = arith.constant 0 : i32
    %c0_i32_0 = arith.constant 0 : i32
    %c0_i32_1 = arith.constant 0 : i32
    return %c0_i32, %c0_i32_0 : i32, i32
  }
  func.func @transform_12(%arg0: i32) -> (i32, i32) {
    %c0_i32 = arith.constant 0 : i32
    %c0_i32_0 = arith.constant 0 : i32
    %c0_i32_1 = arith.constant 0 : i32
    return %c0_i32, %c0_i32_0 : i32, i32
  }
  func.func @transform_13(%arg0: i32) -> (i32, i32) {
    %c0_i32 = arith.constant 0 : i32
    %c0_i32_0 = arith.constant 0 : i32
    %c0_i32_1 = arith.constant 0 : i32
    return %c0_i32, %c0_i32_0 : i32, i32
  }
  func.func @transform_14(%arg0: i32) -> (i32, i32) {
    %c0_i32 = arith.constant 0 : i32
    %c0_i32_0 = arith.constant 0 : i32
    %c0_i32_1 = arith.constant 0 : i32
    return %c0_i32, %c0_i32_0 : i32, i32
  }
  func.func @transform_15(%arg0: i32) -> (i32, i32) {
    %c0_i32 = arith.constant 0 : i32
    %c0_i32_0 = arith.constant 0 : i32
    %c0_i32_1 = arith.constant 0 : i32
    return %c0_i32, %c0_i32_0 : i32, i32
  }
  func.func @transform_16(%arg0: i32) -> (i32, i32) {
    %c0_i32 = arith.constant 0 : i32
    %c0_i32_0 = arith.constant 0 : i32
    %c0_i32_1 = arith.constant 0 : i32
    return %c0_i32, %c0_i32_0 : i32, i32
  }
  func.func @transform_17(%arg0: i32) -> (i32, i32) {
    %c0_i32 = arith.constant 0 : i32
    %c0_i32_0 = arith.constant 0 : i32
    %c0_i32_1 = arith.constant 0 : i32
    return %c0_i32, %c0_i32_0 : i32, i32
  }
  func.func @transform_18(%arg0: i32) -> (i32, i32) {
    %c0_i32 = arith.constant 0 : i32
    %c0_i32_0 = arith.constant 0 : i32
    %c0_i32_1 = arith.constant 0 : i32
    return %c0_i32, %c0_i32_0 : i32, i32
  }
  func.func @transform_19(%arg0: i32) -> (i32, i32) {
    %c0_i32 = arith.constant 0 : i32
    %c0_i32_0 = arith.constant 0 : i32
    return %arg0, %c0_i32 : i32, i32
  }
  func.func @transform_20(%arg0: i32) -> (i32, i32) {
    %c0_i32 = arith.constant 0 : i32
    %c0_i32_0 = arith.constant 0 : i32
    return %arg0, %c0_i32 : i32, i32
  }
}

</mosaic_0001>

<bundles_post_ra>
// kernel: tpu_custom_call.1
= control target key start
LH: loop header
LB: loop body
LE: loop exit
PB: predicated region body
PF: predicated region fallthrough
CT: control target
= control target key end

     0   :  { %s3208_s0 = inlined_call_operand.vmem [shape: bf16[2,576], index: 0, kind: input, shape index: {}]   ;;  %s3209_s1 = inlined_call_operand.vmem [shape: bf16[2,5], index: 1, kind: input, shape index: {}]   ;;  %s3210_s2 = inlined_call_operand.hbm [shape: bf16[2,1056], index: 2, kind: input, shape index: {}, may-alias: {2,20}]   ;;  %s3211_s3 = inlined_call_operand.vmem [shape: bf16[576,32], index: 3, kind: input, shape index: {}]   ;;  %s3212_s4 = inlined_call_operand.vmem [shape: f32[1,32], index: 4, kind: input, shape index: {}]   ;;  %s3213_s5 = inlined_call_operand.vmem [shape: bf16[37,32], index: 5, kind: input, shape index: {}]   ;;  %s3214_s6 = inlined_call_operand.vmem [shape: f32[1,32], index: 6, kind: input, shape index: {}]   ;;  %s3215_s7 = inlined_call_operand.vmem [shape: f32[32,32], index: 7, kind: input, shape index: {}]   ;;  %s3216_s8 = inlined_call_operand.vmem [shape: f32[1,32], index: 8, kind: input, shape index: {}]   ;;  %s3217_s9 = inlined_call_operand.vmem [shape: bf16[32,1056], index: 9, kind: input, shape index: {}]   ;;  %s3218_s10 = inlined_call_operand.vmem [shape: f32[1,1056], index: 10, kind: input, shape index: {}]   ;;  %s3219_s11 = inlined_call_operand.vmem [shape: f32[1056,32], index: 11, kind: input, shape index: {}]   ;;  %s3220_s12 = inlined_call_operand.vmem [shape: bf16[32,1056], index: 12, kind: input, shape index: {}]   ;;  %s3221_s13 = inlined_call_operand.vmem [shape: f32[1,32], index: 13, kind: input, shape index: {}]   ;;  %s3222_s14 = inlined_call_operand.vmem [shape: f32[1,32], index: 14, kind: input, shape index: {}]   ;;  %s3223_s15 = inlined_call_operand.vmem [shape: bf16[32,128], index: 15, kind: input, shape index: {}]   ;;  %s3224_s16 = inlined_call_operand.vmem [shape: f32[1,128], index: 16, kind: input, shape index: {}]   ;;  %s3225_s17 = inlined_call_operand.vmem [shape: f32[1,32], index: 17, kind: input, shape index: {}]   ;;  %s3226_s18 = inlined_call_operand.vmem [shape: f32[1,32], index: 18, kind: input, shape index: {}]   ;;  %s3227_s19 = inlined_call_operand.hbm [shape: f32[2,128], index: 19, kind: output, shape index: {0}]   ;;  %s3228_s20 = inlined_call_operand.hbm [shape: bf16[2,1056], index: 20, kind: output, shape index: {1}, may-alias: {2,20}]  }
   0x1   :  { %3230 = sst [smem:[#allocation11_spill]] %s3208_s0 }
   0x2   :  { %3231 = sst [smem:[#allocation12_spill]] %s3209_s1 }
   0x3   :  { %3232 = sst [smem:[#allocation13_spill]] %s3210_s2 }
   0x4   :  { %3233 = sst [smem:[#allocation14_spill]] %s3211_s3 }
   0x5   :  { %3234 = sst [smem:[#allocation15_spill]] %s3212_s4 }
   0x6   :  { %26 = vsyncpa [#allocation3], 0 }
   0x7   :  { %27 = vsyncpa [#allocation4], 0 }
   0x8   :  { %28 = vsyncpa [#allocation7], 0  ;;  %s3235_s23 = sld [smem:[#allocation13_spill]]  ;;  %s2173_s2 = smov [#allocation2]  }
   0x9   :  { %s40_s25 = sshll.u32 %s2173_s2, 4  ;;  %s41_s25 = int_to_ptr.vmem [resolvable:$true] %s40_s25 }
   0xe   :  { %s38_s24 = sshll.u32 %s3235_s23, 4  ;;  %s39_s24 = int_to_ptr.hbm [resolvable:$true] %s38_s24 }
   0xf   :  { %43 = dma.hbm_to_vmem [thread:$0]  %s39_s24, 144, %s41_s25, [#allocation3]  }
  0x10   :  { %2167 = dma.done.wait [#allocation3], 144  }
  0x11   :  { %2168 = vsyncadd [#allocation3], 4294967152  ;;  %s3236_s27 = sld [smem:[#allocation14_spill]]  ;;  %v2362_v25 = vld [vmem:[#allocation2] sm:$0xff]  ;;  %vm385_vm0 = vcmask 523264   ;;  %vm493_vm1 = vcmask 1041408  }
  0x12   :  { %s3237_s28 = sld [smem:[#allocation11_spill]]  ;;  %v517_v29 = vunpack.c.h.bf16 %v2362_v25  ;;  %v516_v37 = vunpack.c.l.bf16 %v2362_v25  ;;  %v470_v47 = vld [vmem:[%s3213_s5 + $0x10] sm:$0x7]  ;;  %vm494_vm2 = vcmask 1042432   ;;  %v2175_v50 = vmov 65535   ;;  %v2027_v54 = vld [vmem:[%s3213_s5 + $0x8] sm:$0xff] }
  0x13   :  { %s3238_s22 = sld [smem:[#allocation12_spill]]  ;;  %v484_v48 = vunpack.c.l.b16 %v470_v47  ;;  %v495_v51 = vsel %vm493_vm1, 4294967295, %v2175_v50  ;;  %v2026_v55 = vld [vmem:[%s3213_s5] sm:$0xff]  ;;  %v1852_v56 = vld [vmem:[%s3217_s9 + $0x48] sm:$0xf]  ;;  %vm462_vm3 = vcmask 261120  }
  0x14   :  { %v496_v52 = vsel %vm494_vm2, %v495_v51, 0  ;;  %v2041_v57 = vld [vmem:[%s3217_s9 + $0x68] sm:$0xf0]  ;;  %s3239_s0 = sld [smem:[#allocation15_spill]]  ;;  %vm490_vm4 = vcmask 302080   ;;  %vm1155_vm5 = vcmask 254976  }
  0x15   :  { %v487_v49 = vpack.c.b16 %v484_v48, %v484_v48  ;;  %v1853_v58 = vor.u32 %v2041_v57, %v1852_v56  ;;  %v1876_v47 = vld [vmem:[%s3217_s9 + $0x60] sm:$0xf]  ;;  %v2044_v48 = vld [vmem:[%s3217_s9 + $0x80] sm:$0xf0]  ;;  %v1840_v57 = vld [vmem:[%s3217_s9 + $0x18] sm:$0xf] }
  0x16   :  { %v1877_v51 = vor.u32 %v2044_v48, %v1876_v47  ;;  %v860_v47 = vld [vmem:[%s3219_s11 + $0xa8] sm:$0xff]  ;;  %v882_v48 = vld [vmem:[%s3219_s11 + $0x158] sm:$0xff]  ;;  %vm1539_vm2 = vcmask 1045508   ;;  %s1645_s24 = sshll.u32 %s3228_s20, 4  ;;  %s1646_s24 = int_to_ptr.hbm [resolvable:$true] %s1645_s24 }
  0x17   :  { %v1997_v0 = vld [vmem:[%s3236_s27 + $0x38] sm:$0xff]  ;;  %v1996_v4 = vld [vmem:[%s3236_s27 + $0x30] sm:$0xff]  ;;  %v1995_v8 = vld [vmem:[%s3236_s27 + $0x28] sm:$0xff]  ;;  %v498_v53 = vand.u32 %v496_v52, %v487_v49 }
  0x18   :  { %v2013_v1 = vld [vmem:[%s3236_s27 + $0xb8] sm:$0xff]  ;;  %388 = vmatpush.bf16.msra.mxu0 %v1997_v0  ;;  %v2012_v5 = vld [vmem:[%s3236_s27 + $0xb0] sm:$0xff]  ;;  %v2011_v9 = vld [vmem:[%s3236_s27 + $0xa8] sm:$0xff] }
  0x19   :  { %v2021_v2 = vld [vmem:[%s3236_s27 + $0xf8] sm:$0xff]  ;;  %414 = vmatpush.bf16.msra.mxu2 %v2013_v1  ;;  %v2020_v6 = vld [vmem:[%s3236_s27 + $0xf0] sm:$0xff]  ;;  %v2019_v10 = vld [vmem:[%s3236_s27 + $0xe8] sm:$0xff] }
  0x1a   :  { %v2005_v3 = vld [vmem:[%s3236_s27 + $0x78] sm:$0xff]  ;;  %427 = vmatpush.bf16.msra.mxu3 %v2021_v2  ;;  %v2004_v7 = vld [vmem:[%s3236_s27 + $0x70] sm:$0xff]  ;;  %v2003_v11 = vld [vmem:[%s3236_s27 + $0x68] sm:$0xff] }
  0x1b   :  { %401 = vmatpush.bf16.msra.mxu1 %v2005_v3  ;;  %v1994_v12 = vld [vmem:[%s3236_s27 + $0x20] sm:$0xff]  ;;  %v1993_v17 = vld [vmem:[%s3236_s27 + $0x18] sm:$0xff]  ;;  %v1992_v21 = vld [vmem:[%s3236_s27 + $0x10] sm:$0xff] }
  0x1c   :  { %389 = vmatpush.bf16.msra.mxu0 %v1996_v4  ;;  %v2010_v13 = vld [vmem:[%s3236_s27 + $0xa0] sm:$0xff]  ;;  %v2009_v18 = vld [vmem:[%s3236_s27 + $0x98] sm:$0xff]  ;;  %v2008_v22 = vld [vmem:[%s3236_s27 + $0x90] sm:$0xff] }
  0x1d   :  { %415 = vmatpush.bf16.msra.mxu2 %v2012_v5  ;;  %v81_v14 = vld [vmem:[%s3237_s28] sm:$0x1f]  ;;  %v2017_v19 = vld [vmem:[%s3236_s27 + $0xd8] sm:$0xff]  ;;  %v2016_v23 = vld [vmem:[%s3236_s27 + $0xd0] sm:$0xff]  ;;  %s2174_s28 = smov 32  }
  0x1e   :  { %428 = vmatpush.bf16.msra.mxu3 %v2020_v6  ;;  %v2018_v15 = vld [vmem:[%s3236_s27 + $0xe0] sm:$0xff]  ;;  %159 = vst [vmem:[#allocation1] ss:$9 sm:$0xff] %v81_v14  ;;  %v2001_v20 = vld [vmem:[%s3236_s27 + $0x58] sm:$0xff]  ;;  %v2000_v26 = vld [vmem:[%s3236_s27 + $0x50] sm:$0xff] }
  0x1f   :  { %402 = vmatpush.bf16.msra.mxu1 %v2004_v7  ;;  %v2002_v16 = vld [vmem:[%s3236_s27 + $0x60] sm:$0xff]  ;;  %v1991_v33 = vld [vmem:[%s3236_s27 + $0x8] sm:$0xff]  ;;  %v2025_v43 = vld [vmem:[%s3236_s27 + $0x118] sm:$0xff] }
  0x20   :  { %390 = vmatpush.bf16.msra.mxu0 %v1995_v8  ;;  %v455_v24 = vld [vmem:[%s3238_s22] sm:$0x1]  ;;  %v2007_v34 = vld [vmem:[%s3236_s27 + $0x88] sm:$0xff]  ;;  %v2024_v44 = vld [vmem:[%s3236_s27 + $0x110] sm:$0xff]  ;;  %s1634_s22 = sshll.u32 %s3227_s19, 4  ;;  %s2178_s19 = smov [#allocation6]   ;;  %s1635_s22 = int_to_ptr.hbm [resolvable:$true] %s1634_s22 }
  0x21   :  { %416 = vmatpush.bf16.msra.mxu2 %v2011_v9  ;;  %v2015_v35 = vld [vmem:[%s3236_s27 + $0xc8] sm:$0xff]  ;;  %v1990_v38 = vld [vmem:[%s3236_s27] sm:$0xff] }
  0x22   :  { %429 = vmatpush.bf16.msra.mxu3 %v2019_v10  ;;  %v1999_v36 = vld [vmem:[%s3236_s27 + $0x48] sm:$0xff]  ;;  %v2006_v39 = vld [vmem:[%s3236_s27 + $0x80] sm:$0xff] }
  0x23   :  { %403 = vmatpush.bf16.msra.mxu1 %v2003_v11  ;;  %v2014_v40 = vld [vmem:[%s3236_s27 + $0xc0] sm:$0xff]  ;;  %v2023_v45 = vld [vmem:[%s3236_s27 + $0x108] sm:$0xff] }
  0x24   :  { %391 = vmatpush.bf16.msra.mxu0 %v1994_v12  ;;  %v1998_v41 = vld [vmem:[%s3236_s27 + $0x40] sm:$0xff]  ;;  %v1878_v52 = vld [vmem:[%s3217_s9 + $0x84] sm:$0xf0] }
  0x25   :  { %417 = vmatpush.bf16.msra.mxu2 %v2010_v13  ;;  %v160_v27 = vld [vmem:[#allocation1] sm:$0xff]  ;;  %v162_v28 = vld [vmem:[#allocation1 + $0x12] sm:$0xff]  ;;  %v161_v31 = vld [vmem:[#allocation1 + $0x9] sm:$0xff] }
  0x26   :  { %430 = vmatpush.bf16.msra.mxu3 %v2018_v15  ;;  %v163_v30 = vld [vmem:[#allocation1 + $0x1b] sm:$0xff]  ;;  %v164_v32 = vld [vmem:[#allocation1 + $0x24] sm:$0xff]  ;;  %v2037_v15 = vld [vmem:[%s3217_s9 + $0x4c] sm:$0xf] }
  0x27   :  { %404 = vmatpush.bf16.msra.mxu1 %v2002_v16  ;;  %457 = vst [vmem:[#allocation1] ss:$9 sm:$0xff] %v455_v24  ;;  %v2022_v46 = vld [vmem:[%s3236_s27 + $0x100] sm:$0xff]  ;;  %v1854_v16 = vld [vmem:[%s3217_s9 + $0x6c] sm:$0xf0] }
  0x28   :  { %392 = vmatpush.bf16.msra.mxu0 %v1993_v17  ;;  %810 = vst [vmem:[#allocation1 + $0x20] ss:$4 sm:$0xff] %v517_v29  ;;  %v2072_v60 = vld [vmem:[%s3239_s0] ss:$0 sm:$0xff]  ;;  %v1860_v17 = vld [vmem:[%s3217_s9 + $0x50] sm:$0xf] }
  0x29   :  { %418 = vmatpush.bf16.msra.mxu2 %v2009_v18  ;;  %v1857_v18 = vor.u32 %v2037_v15, %v1854_v16  ;;  %v1816_v24 = vld [vmem:[%s3217_s9] sm:$0xf]  ;;  %v2040_v49 = vld [vmem:[%s3217_s9 + $0x64] sm:$0xf]  ;;  %v775_v15 = vld [vmem:[%s3215_s7 + $0x8] sm:$0xff] }
  0x2a   :  { %431 = vmatpush.bf16.msra.mxu3 %v2017_v19  ;;  %v2042_v19 = vld [vmem:[%s3217_s9 + $0x70] sm:$0xf0] }
  0x2b   :  { %405 = vmatpush.bf16.msra.mxu1 %v2001_v20  ;;  %v2038_v20 = vld [vmem:[%s3217_s9 + $0x54] sm:$0xf] }
  0x2c   :  { %393 = vmatpush.bf16.msra.mxu0 %v1992_v21  ;;  %v1862_v21 = vld [vmem:[%s3217_s9 + $0x74] sm:$0xf0]  ;;  %v853_v16 = vld [vmem:[%s3219_s11 + $0x70] sm:$0xff] }
  0x2d   :  { %419 = vmatpush.bf16.msra.mxu2 %v2008_v22  ;;  %v1861_v22 = vor.u32 %v2042_v19, %v1860_v17  ;;  %v869_v17 = vld [vmem:[%s3219_s11 + $0xf0] sm:$0xff]  ;;  %v774_v19 = vld [vmem:[%s3215_s7] sm:$0xff] }
  0x2e   :  { %432 = vmatpush.bf16.msra.mxu3 %v2016_v23  ;;  %v458_v42 = vld [vmem:[#allocation1] sm:$0xff]  ;;  %v1865_v23 = vor.u32 %v2038_v20, %v1862_v21  ;;  %v868_v20 = vld [vmem:[%s3219_s11 + $0xe8] sm:$0xff] }
  0x2f   :  { %406 = vmatpush.bf16.msra.mxu1 %v2000_v26  ;;  %460 = vrot.lane.b32.xlu0 %v458_v42, %s2174_s28  ;;  %808 = vst [vmem:[#allocation1] ss:$4 sm:$0xff] %v516_v37  ;;  %v2032_v26 = vld [vmem:[%s3217_s9 + $0x20] sm:$0xf0] }
  0x30   :  { %394 = vmatpush.bf16.msra.mxu0 %v1991_v33  ;;  %v851_v21 = vld [vmem:[%s3219_s11 + $0x60] sm:$0xff] }
  0x31   :  { %420 = vmatpush.bf16.msra.mxu2 %v2007_v34 }
  0x32   :  { %433 = vmatpush.bf16.msra.mxu3 %v2015_v35  ;;  %v2029_v35 = vld [vmem:[%s3217_s9 + $0xc] sm:$0xf] }
  0x33   :  { %407 = vmatpush.bf16.msra.mxu1 %v1999_v36  ;;  %v1826_v36 = vld [vmem:[%s3217_s9 + $0x2c] sm:$0xf0] }
  0x34   :  { %395 = vmatpush.bf16.msra.mxu0 %v1990_v38  ;;  %v1829_v38 = vor.u32 %v2029_v35, %v1826_v36  ;;  %v885_v35 = vld [vmem:[%s3219_s11 + $0x170] sm:$0xff] }
  0x35   :  { %421 = vmatpush.bf16.msra.mxu2 %v2006_v39  ;;  %v1868_v39 = vld [vmem:[%s3217_s9 + $0x58] sm:$0xf]  ;;  %v901_v36 = vld [vmem:[%s3219_s11 + $0x1f0] sm:$0xff] }
  0x36   :  { %434 = vmatpush.bf16.msra.mxu3 %v2014_v40  ;;  %v2043_v40 = vld [vmem:[%s3217_s9 + $0x78] sm:$0xf0] }
  0x37   :  { %408 = vmatpush.bf16.msra.mxu1 %v1998_v41  ;;  %396 = vmatmul.bf16.vlgmr.msra.gmra.mxu0 %v160_v27  ;;  %v2028_v27 = vld [vmem:[%s3217_s9 + $0x4] sm:$0xf]  ;;  %v1832_v41 = vld [vmem:[%s3217_s9 + $0x10] sm:$0xf]  ;;  %v1869_v42 = vor.u32 %v2043_v40, %v1868_v39  ;;  %v862_v39 = vld [vmem:[%s3219_s11 + $0xb8] sm:$0xff] }
  0x38   :  { %444 = vmatpush.bf16.msrb.mxu0 %v2025_v43  ;;  %422 = vmatmul.bf16.vlgmr.msra.gmra.mxu2 %v162_v28  ;;  %v1817_v28 = vor.u32 %v2032_v26, %v1816_v24  ;;  %v2034_v43 = vld [vmem:[%s3217_s9 + $0x30] sm:$0xf0]  ;;  %v866_v24 = vld [vmem:[%s3219_s11 + $0xd8] sm:$0xff]  ;;  %v884_v40 = vld [vmem:[%s3219_s11 + $0x168] sm:$0xff] }
  0x39   :  { %435 = vmatmul.bf16.vlgmr.msra.gmra.mxu3 %v163_v30  ;;  %663 = vmatpush.bf16.msrb.mxu2 %v1853_v58  ;;  %v1818_v30 = vld [vmem:[%s3217_s9 + $0x24] sm:$0xf0]  ;;  %v1833_v50 = vor.u32 %v2034_v43, %v1832_v41  ;;  %v2035_v58 = vld [vmem:[%s3217_s9 + $0x38] sm:$0xf0]  ;;  %v849_v26 = vld [vmem:[%s3219_s11 + $0x50] sm:$0xff] }
  0x3a   :  { %409 = vmatmul.bf16.vlgmr.msra.gmra.mxu1 %v161_v31  ;;  %676 = vmatpush.bf16.msrb.mxu3 %v1857_v18  ;;  %v1824_v31 = vld [vmem:[%s3217_s9 + $0x8] sm:$0xf]  ;;  %v1821_v33 = vor.u32 %v2028_v27, %v1818_v30  ;;  %v865_v27 = vld [vmem:[%s3219_s11 + $0xd0] sm:$0xff] }
  0x3b   :  { %505 = vmatpush.bf16.msrb.mxu1 %v498_v53  ;;  %v2030_v53 = vld [vmem:[%s3217_s9 + $0x14] sm:$0xf]  ;;  %v852_v18 = vld [vmem:[%s3219_s11 + $0x68] sm:$0xff] }
  0x3c   :  { %445 = vmatpush.bf16.msrb.mxu0 %v2024_v44  ;;  %v2039_v44 = vld [vmem:[%s3217_s9 + $0x5c] sm:$0xf]  ;;  %v864_v30 = vld [vmem:[%s3219_s11 + $0xc8] sm:$0xff]  ;;  %v861_v43 = vld [vmem:[%s3219_s11 + $0xb0] sm:$0xff] }
  0x3d   :  { %664 = vmatpush.bf16.msrb.mxu2 %v1817_v28  ;;  %v848_v28 = vld [vmem:[%s3219_s11 + $0x48] sm:$0xff] }
  0x3e   :  { %677 = vmatpush.bf16.msrb.mxu3 %v1821_v33  ;;  %v847_v33 = vld [vmem:[%s3219_s11 + $0x40] sm:$0xff]  ;;  %v900_v41 = vld [vmem:[%s3219_s11 + $0x1e8] sm:$0xff] }
  0x3f   :  { %506 = vmatpush.bf16.msrb.mxu1 %v2027_v54  ;;  %v1834_v54 = vld [vmem:[%s3217_s9 + $0x34] sm:$0xf0] }
  0x40   :  { %446 = vmatpush.bf16.msrb.mxu0 %v2023_v45  ;;  %v1870_v45 = vld [vmem:[%s3217_s9 + $0x7c] sm:$0xf0]  ;;  %v1837_v56 = vor.u32 %v2030_v53, %v1834_v54  ;;  %v897_v53 = vld [vmem:[%s3219_s11 + $0x1d0] sm:$0xff]  ;;  %v842_v54 = vld [vmem:[%s3219_s11 + $0x18] sm:$0xff] }
  0x41   :  { %715 = vmatpush.bf16.msra.mxu2 %v1869_v42  ;;  %v845_v42 = vld [vmem:[%s3219_s11 + $0x30] sm:$0xff] }
  0x43   :  { %507 = vmatpush.bf16.msrb.mxu1 %v2026_v55  ;;  %v1881_v55 = vor.u32 %v2040_v49, %v1878_v52  ;;  %v898_v49 = vld [vmem:[%s3219_s11 + $0x1d8] sm:$0xff]  ;;  %v881_v52 = vld [vmem:[%s3219_s11 + $0x150] sm:$0xff] }
  0x44   :  { %447 = vmatpush.bf16.msrb.mxu0 %v2022_v46  ;;  %v1873_v46 = vor.u32 %v2039_v44, %v1870_v45  ;;  %v883_v44 = vld [vmem:[%s3219_s11 + $0x160] sm:$0xff] }
  0x45   :  { %716 = vmatpush.bf16.msra.mxu2 %v1833_v50  ;;  %v899_v45 = vld [vmem:[%s3219_s11 + $0x1e0] sm:$0xff] }
  0x46   :  { %728 = vmatpush.bf16.msra.mxu3 %v1873_v46  ;;  %v844_v46 = vld [vmem:[%s3219_s11 + $0x28] sm:$0xff]  ;;  %v843_v50 = vld [vmem:[%s3219_s11 + $0x20] sm:$0xff] }
  0x47   :  { %1804 = vmatmul.msk.bf16.vlgmr.msrb.gmra.mxu0 %vm385_vm0, %v164_v32  ;;  %702 = vmatpush.bf16.msra.mxu1 %v1865_v23  ;;  %v2033_v32 = vld [vmem:[%s3217_s9 + $0x28] sm:$0xf0]  ;;  %v850_v23 = vld [vmem:[%s3219_s11 + $0x58] sm:$0xff] }
  0x48   :  { %689 = vmatpush.bf16.msra.mxu0 %v1861_v22  ;;  %v1825_v34 = vor.u32 %v2033_v32, %v1824_v31  ;;  %v867_v22 = vld [vmem:[%s3219_s11 + $0xe0] sm:$0xff]  ;;  %v886_v31 = vld [vmem:[%s3219_s11 + $0x178] sm:$0xff] }
  0x49   :  { %v902_v32 = vld [vmem:[%s3219_s11 + $0x1f8] sm:$0xff] }
  0x4a   :  { %729 = vmatpush.bf16.msra.mxu3 %v1837_v56  ;;  %v880_v56 = vld [vmem:[%s3219_s11 + $0x148] sm:$0xff] }
  0x4b   :  { %703 = vmatpush.bf16.msra.mxu1 %v1829_v38  ;;  %v846_v38 = vld [vmem:[%s3219_s11 + $0x38] sm:$0xff] }
  0x4c   :  { %690 = vmatpush.bf16.msra.mxu0 %v1825_v34  ;;  %v863_v34 = vld [vmem:[%s3219_s11 + $0xc0] sm:$0xff] }
  0x50   :  { %741 = vmatpush.bf16.msrb.mxu0 %v1877_v51  ;;  %v859_v51 = vld [vmem:[%s3219_s11 + $0xa0] sm:$0xff] }
  0xa1   :  { %v461_v11 = vpop.permute.xlu0 %460 }
  0xb4   :  { %v397_v59 = vpop.f32.mrf.mxu0 }
  0xb5   :  { %v398_v62 = vadd.f32 %v2072_v60, %v397_v59  ;;  %v2031_v59 = vld [vmem:[%s3217_s9 + $0x1c] sm:$0xf]  ;;  %v1841_v60 = vor.u32 %v2035_v58, %v1840_v57  ;;  %v896_v57 = vld [vmem:[%s3219_s11 + $0x1c8] sm:$0xff]  ;;  %v841_v58 = vld [vmem:[%s3219_s11 + $0x10] sm:$0xff] }
  0xb7   :  { %v410_v61 = vpop.f32.mrf.mxu1  ;;  %742 = vmatpush.bf16.msrb.mxu0 %v1841_v60  ;;  %v879_v60 = vld [vmem:[%s3219_s11 + $0x140] sm:$0xff] }
  0xb8   :  { %v411_v2 = vadd.f32 %v410_v61, %v398_v62  ;;  %v1842_v61 = vld [vmem:[%s3217_s9 + $0x3c] sm:$0xf0] }
  0xb9   :  { %v1845_v62 = vor.u32 %v2031_v59, %v1842_v61  ;;  %v857_v59 = vld [vmem:[%s3219_s11 + $0x90] sm:$0xff]  ;;  %v895_v61 = vld [vmem:[%s3219_s11 + $0x1c0] sm:$0xff] }
  0xbb   :  { %v423_v63 = vpop.f32.mrf.mxu2 }
  0xbc   :  { %v436_v0 = vpop.f32.mrf.mxu3  ;;  %v399_v1 = vpop.f32.mrf.mxu0  ;;  %v424_v4 = vadd.f32 %v423_v63, %v411_v2  ;;  %v2073_v63 = vld [vmem:[%s3214_s6] ss:$0 sm:$0xff]  ;;  %v1884_v2 = vld [vmem:[%s3217_s9 + $0x68] sm:$0xf] }
  0xbe   :  { %v437_v6 = vadd.f32 %v436_v0, %v424_v4 }
  0xbf   :  { %v412_v3 = vpop.f32.mrf.mxu1 }
  0xc0   :  { %v2045_v3 = vld [vmem:[%s3217_s9 + $0x88] sm:$0xf0] }
  0xc3   :  { %v425_v5 = vpop.f32.mrf.mxu2 }
  0xc4   :  { %v438_v7 = vpop.f32.mrf.mxu3  ;;  %v449_v8 = vpop.f32.mrf.mxu0 }
  0xc5   :  { %v450_v9 = vadd.f32 %v449_v8, %v437_v6  ;;  %v1885_v7 = vor.u32 %v2045_v3, %v1884_v2  ;;  %v1848_v8 = vld [vmem:[%s3217_s9 + $0x20] sm:$0xf] }
  0xc6   :  { %v839_v2 = vld [vmem:[%s3219_s11] sm:$0xff] }
  0xc7   :  { %v453_v10 = vmax.f32 %v450_v9, 0.0  ;;  %v2036_v9 = vld [vmem:[%s3217_s9 + $0x40] sm:$0xf0] }
  0xc8   :  { %v855_v3 = vld [vmem:[%s3219_s11 + $0x80] sm:$0xff] }
  0xc9   :  { %v454_v12 = vpack.c.bf16 %v453_v10, %v453_v10  ;;  %v777_v10 = vld [vmem:[%s3215_s7 + $0x18] sm:$0xff] }
  0xcb   :  { %v465_v13 = vsel %vm462_vm3, %v454_v12, %v461_v11  ;;  %v776_v11 = vld [vmem:[%s3215_s7 + $0x10] sm:$0xff]  ;;  %v1849_v12 = vor.u32 %v2036_v9, %v1848_v8  ;;  %v876_v8 = vld [vmem:[%s3219_s11 + $0x128] sm:$0xff] }
  0xcc   :  { %v451_v14 = vpop.f32.mrf.mxu0  ;;  %1813 = vmatmul.msk.bf16.vlgmr.msrb.gmra.mxu1 %vm490_vm4, %v465_v13  ;;  %v854_v13 = vld [vmem:[%s3219_s11 + $0x78] sm:$0xff]  ;;  %v892_v9 = vld [vmem:[%s3219_s11 + $0x1a8] sm:$0xff]  ;;  %vm1600_vm4 = vcmask 1040384  }
  0xcd   :  { %754 = vmatpush.bf16.msrb.mxu1 %v1881_v55  ;;  %v870_v14 = vld [vmem:[%s3219_s11 + $0xf8] sm:$0xff] }
  0xce   :  { %v858_v55 = vld [vmem:[%s3219_s11 + $0x98] sm:$0xff] }
  0xd1   :  { %755 = vmatpush.bf16.msrb.mxu1 %v1845_v62  ;;  %v840_v62 = vld [vmem:[%s3219_s11 + $0x8] sm:$0xff] }
 0x149   :  { %v509_v0 = vpop.f32.mrf.mxu1 }
 0x14a   :  { %v510_v1 = vadd.f32 %v2073_v63, %v509_v0  ;;  %v856_v63 = vld [vmem:[%s3219_s11 + $0x88] sm:$0xff]  ;;  %v878_v0 = vld [vmem:[%s3219_s11 + $0x138] sm:$0xff] }
 0x14c   :  { %2081 = vtanh.f32 %v510_v1  ;;  %v894_v1 = vld [vmem:[%s3219_s11 + $0x1b8] sm:$0xff] }
 0x151   :  { %v511_v4 = vpop.f32.mrf.mxu1 }
 0x152   :  { %v2528_v5 = vpop.eup %2081  ;;  %v877_v4 = vld [vmem:[%s3219_s11 + $0x130] sm:$0xff] }
 0x153   :  { %v2532_v6 = vpack.c.bf16 %v2528_v5, %v2528_v5 }
 0x155   :  { %1886 = vmatmul.msk.bf16.vlgmr.msrb.gmra.mxu2 %vm462_vm3, %v2532_v6  ;;  %1887 = vmatmul.msk.bf16.vlgmr.msrb.gmra.mxu3 %vm462_vm3, %v2532_v6 }
 0x156   :  { %1888 = vmatmul.msk.bf16.vlgmr.msra.gmra.mxu0 %vm462_vm3, %v2532_v6  ;;  %1889 = vmatmul.msk.bf16.vlgmr.msra.gmra.mxu1 %vm462_vm3, %v2532_v6 }
 0x157   :  { %767 = vmatpush.bf16.msrb.mxu2 %v1885_v7  ;;  %797 = vmatpush.msrb.mxu3 %v777_v10  ;;  %v934_v7 = vld [vmem:[%s3219_s11 + $0x2f8] sm:$0xff]  ;;  %v917_v10 = vld [vmem:[%s3219_s11 + $0x270] sm:$0xff] }
 0x158   :  { %974 = vmatpush.msra.mxu0 %v854_v13  ;;  %994 = vmatpush.msra.mxu1 %v870_v14  ;;  %v891_v13 = vld [vmem:[%s3219_s11 + $0x1a0] sm:$0xff]  ;;  %v874_v14 = vld [vmem:[%s3219_s11 + $0x118] sm:$0xff] }
 0x159   :  { %798 = vmatpush.msrb.mxu3 %v776_v11  ;;  %v933_v11 = vld [vmem:[%s3219_s11 + $0x2f0] sm:$0xff] }
 0x15a   :  { %975 = vmatpush.msra.mxu0 %v853_v16  ;;  %995 = vmatpush.msra.mxu1 %v869_v17  ;;  %v873_v16 = vld [vmem:[%s3219_s11 + $0x110] sm:$0xff] }
 0x15b   :  { %768 = vmatpush.bf16.msrb.mxu2 %v1849_v12  ;;  %799 = vmatpush.msrb.mxu3 %v775_v15  ;;  %v875_v12 = vld [vmem:[%s3219_s11 + $0x120] sm:$0xff]  ;;  %v890_v15 = vld [vmem:[%s3219_s11 + $0x198] sm:$0xff]  ;;  %v889_v17 = vld [vmem:[%s3219_s11 + $0x190] sm:$0xff] }
 0x15c   :  { %976 = vmatpush.msra.mxu0 %v852_v18  ;;  %996 = vmatpush.msra.mxu1 %v868_v20  ;;  %v872_v18 = vld [vmem:[%s3219_s11 + $0x108] sm:$0xff]  ;;  %v871_v20 = vld [vmem:[%s3219_s11 + $0x100] sm:$0xff] }
 0x15d   :  { %800 = vmatpush.msrb.mxu3 %v774_v19  ;;  %v888_v19 = vld [vmem:[%s3219_s11 + $0x188] sm:$0xff] }
 0x15e   :  { %977 = vmatpush.msra.mxu0 %v851_v21  ;;  %997 = vmatpush.msra.mxu1 %v867_v22  ;;  %v887_v21 = vld [vmem:[%s3219_s11 + $0x180] sm:$0xff]  ;;  %v950_v22 = vld [vmem:[%s3219_s11 + $0x378] sm:$0xff] }
 0x160   :  { %978 = vmatpush.msra.mxu0 %v850_v23  ;;  %998 = vmatpush.msra.mxu1 %v866_v24  ;;  %v966_v23 = vld [vmem:[%s3219_s11 + $0x3f8] sm:$0xff]  ;;  %v949_v24 = vld [vmem:[%s3219_s11 + $0x370] sm:$0xff] }
 0x162   :  { %979 = vmatpush.msra.mxu0 %v849_v26  ;;  %999 = vmatpush.msra.mxu1 %v865_v27  ;;  %v965_v26 = vld [vmem:[%s3219_s11 + $0x3f0] sm:$0xff]  ;;  %v948_v27 = vld [vmem:[%s3219_s11 + $0x368] sm:$0xff] }
 0x164   :  { %980 = vmatpush.msra.mxu0 %v848_v28  ;;  %1000 = vmatpush.msra.mxu1 %v864_v30  ;;  %v964_v28 = vld [vmem:[%s3219_s11 + $0x3e8] sm:$0xff]  ;;  %v947_v30 = vld [vmem:[%s3219_s11 + $0x360] sm:$0xff] }
 0x165   :  { %1890 = vmatmul.msk.bf16.vlgmr.msra.gmra.mxu2 %vm462_vm3, %v2532_v6  ;;  %1891 = vmatmul.msk.bf16.vlgmr.msra.gmra.mxu3 %vm462_vm3, %v2532_v6 }
 0x166   :  { %1892 = vmatmul.msk.bf16.vlgmr.msrb.gmra.mxu0 %vm462_vm3, %v2532_v6  ;;  %1893 = vmatmul.msk.bf16.vlgmr.msrb.gmra.mxu1 %vm462_vm3, %v2532_v6 }
 0x167   :  { %1014 = vmatpush.msra.mxu2 %v886_v31  ;;  %1034 = vmatpush.msra.mxu3 %v902_v32  ;;  %v963_v31 = vld [vmem:[%s3219_s11 + $0x3e0] sm:$0xff]  ;;  %v946_v32 = vld [vmem:[%s3219_s11 + $0x358] sm:$0xff] }
 0x168   :  { %981 = vmatpush.msra.mxu0 %v847_v33  ;;  %1001 = vmatpush.msra.mxu1 %v863_v34  ;;  %v962_v33 = vld [vmem:[%s3219_s11 + $0x3d8] sm:$0xff]  ;;  %v916_v34 = vld [vmem:[%s3219_s11 + $0x268] sm:$0xff] }
 0x169   :  { %1015 = vmatpush.msra.mxu2 %v885_v35  ;;  %1035 = vmatpush.msra.mxu3 %v901_v36  ;;  %v932_v35 = vld [vmem:[%s3219_s11 + $0x2e8] sm:$0xff]  ;;  %v945_v36 = vld [vmem:[%s3219_s11 + $0x350] sm:$0xff] }
 0x16a   :  { %982 = vmatpush.msra.mxu0 %v846_v38  ;;  %1002 = vmatpush.msra.mxu1 %v862_v39  ;;  %v961_v38 = vld [vmem:[%s3219_s11 + $0x3d0] sm:$0xff]  ;;  %v915_v39 = vld [vmem:[%s3219_s11 + $0x260] sm:$0xff] }
 0x16b   :  { %1016 = vmatpush.msra.mxu2 %v884_v40  ;;  %1036 = vmatpush.msra.mxu3 %v900_v41  ;;  %v931_v40 = vld [vmem:[%s3219_s11 + $0x2e0] sm:$0xff]  ;;  %v944_v41 = vld [vmem:[%s3219_s11 + $0x348] sm:$0xff] }
 0x16c   :  { %983 = vmatpush.msra.mxu0 %v845_v42  ;;  %1003 = vmatpush.msra.mxu1 %v861_v43  ;;  %v960_v42 = vld [vmem:[%s3219_s11 + $0x3c8] sm:$0xff]  ;;  %v914_v43 = vld [vmem:[%s3219_s11 + $0x258] sm:$0xff] }
 0x16d   :  { %1017 = vmatpush.msra.mxu2 %v883_v44  ;;  %1037 = vmatpush.msra.mxu3 %v899_v45  ;;  %v930_v44 = vld [vmem:[%s3219_s11 + $0x2d8] sm:$0xff]  ;;  %v943_v45 = vld [vmem:[%s3219_s11 + $0x340] sm:$0xff] }
 0x16e   :  { %984 = vmatpush.msra.mxu0 %v844_v46  ;;  %1004 = vmatpush.msra.mxu1 %v860_v47  ;;  %v959_v46 = vld [vmem:[%s3219_s11 + $0x3c0] sm:$0xff]  ;;  %v913_v47 = vld [vmem:[%s3219_s11 + $0x250] sm:$0xff] }
 0x16f   :  { %1018 = vmatpush.msra.mxu2 %v882_v48  ;;  %1038 = vmatpush.msra.mxu3 %v898_v49  ;;  %v929_v48 = vld [vmem:[%s3219_s11 + $0x2d0] sm:$0xff]  ;;  %v942_v49 = vld [vmem:[%s3219_s11 + $0x338] sm:$0xff] }
 0x170   :  { %985 = vmatpush.msra.mxu0 %v843_v50  ;;  %1005 = vmatpush.msra.mxu1 %v859_v51  ;;  %v958_v50 = vld [vmem:[%s3219_s11 + $0x3b8] sm:$0xff]  ;;  %v912_v51 = vld [vmem:[%s3219_s11 + $0x248] sm:$0xff] }
 0x171   :  { %1019 = vmatpush.msra.mxu2 %v881_v52  ;;  %1039 = vmatpush.msra.mxu3 %v897_v53  ;;  %v928_v52 = vld [vmem:[%s3219_s11 + $0x2c8] sm:$0xff]  ;;  %v941_v53 = vld [vmem:[%s3219_s11 + $0x330] sm:$0xff] }
 0x172   :  { %986 = vmatpush.msra.mxu0 %v842_v54  ;;  %1006 = vmatpush.msra.mxu1 %v858_v55  ;;  %v957_v54 = vld [vmem:[%s3219_s11 + $0x3b0] sm:$0xff]  ;;  %v911_v55 = vld [vmem:[%s3219_s11 + $0x240] sm:$0xff] }
 0x173   :  { %1020 = vmatpush.msra.mxu2 %v880_v56  ;;  %1040 = vmatpush.msra.mxu3 %v896_v57  ;;  %v927_v56 = vld [vmem:[%s3219_s11 + $0x2c0] sm:$0xff]  ;;  %v940_v57 = vld [vmem:[%s3219_s11 + $0x328] sm:$0xff] }
 0x174   :  { %987 = vmatpush.msra.mxu0 %v841_v58  ;;  %1007 = vmatpush.msra.mxu1 %v857_v59  ;;  %v956_v58 = vld [vmem:[%s3219_s11 + $0x3a8] sm:$0xff]  ;;  %v910_v59 = vld [vmem:[%s3219_s11 + $0x238] sm:$0xff] }
 0x175   :  { %1894 = vmatmul.msk.bf16.vlgmr.msrb.gmra.mxu2 %vm462_vm3, %v2532_v6  ;;  %1895 = vmatmul.msk.f32.vlgmr.msrb.gmra.mxu3 %vm462_vm3, %v2528_v5  ;;  %v893_v5 = vld [vmem:[%s3219_s11 + $0x1b0] sm:$0xff]  ;;  %v918_v6 = vld [vmem:[%s3219_s11 + $0x278] sm:$0xff] }
 0x176   :  { %1021 = vmatpush.msra.mxu2 %v879_v60  ;;  %1041 = vmatpush.msra.mxu3 %v895_v61  ;;  %v926_v60 = vld [vmem:[%s3219_s11 + $0x2b8] sm:$0xff]  ;;  %v939_v61 = vld [vmem:[%s3219_s11 + $0x320] sm:$0xff] }
 0x177   :  { %988 = vmatpush.msra.mxu0 %v840_v62  ;;  %1008 = vmatpush.msra.mxu1 %v856_v63  ;;  %v955_v62 = vld [vmem:[%s3219_s11 + $0x3a0] sm:$0xff]  ;;  %v909_v63 = vld [vmem:[%s3219_s11 + $0x230] sm:$0xff] }
 0x178   :  { %1022 = vmatpush.msra.mxu2 %v878_v0  ;;  %1042 = vmatpush.msra.mxu3 %v894_v1  ;;  %v925_v0 = vld [vmem:[%s3219_s11 + $0x2b0] sm:$0xff]  ;;  %v938_v1 = vld [vmem:[%s3219_s11 + $0x318] sm:$0xff] }
 0x179   :  { %989 = vmatpush.msra.mxu0 %v839_v2  ;;  %1009 = vmatpush.msra.mxu1 %v855_v3  ;;  %v954_v2 = vld [vmem:[%s3219_s11 + $0x398] sm:$0xff]  ;;  %v908_v3 = vld [vmem:[%s3219_s11 + $0x228] sm:$0xff] }
 0x17a   :  { %1023 = vmatpush.msra.mxu2 %v877_v4  ;;  %1043 = vmatpush.msra.mxu3 %v893_v5  ;;  %v924_v4 = vld [vmem:[%s3219_s11 + $0x2a8] sm:$0xff]  ;;  %v937_v5 = vld [vmem:[%s3219_s11 + $0x310] sm:$0xff] }
 0x17b   :  { %1054 = vmatpush.msrb.mxu0 %v918_v6  ;;  %1074 = vmatpush.msrb.mxu1 %v934_v7  ;;  %v953_v6 = vld [vmem:[%s3219_s11 + $0x390] sm:$0xff]  ;;  %v907_v7 = vld [vmem:[%s3219_s11 + $0x220] sm:$0xff] }
 0x17c   :  { %1024 = vmatpush.msra.mxu2 %v876_v8  ;;  %1044 = vmatpush.msra.mxu3 %v892_v9  ;;  %v923_v8 = vld [vmem:[%s3219_s11 + $0x2a0] sm:$0xff]  ;;  %v936_v9 = vld [vmem:[%s3219_s11 + $0x308] sm:$0xff] }
 0x17d   :  { %1055 = vmatpush.msrb.mxu0 %v917_v10  ;;  %1075 = vmatpush.msrb.mxu1 %v933_v11  ;;  %v952_v10 = vld [vmem:[%s3219_s11 + $0x388] sm:$0xff]  ;;  %v906_v11 = vld [vmem:[%s3219_s11 + $0x218] sm:$0xff] }
 0x17e   :  { %1025 = vmatpush.msra.mxu2 %v875_v12  ;;  %1045 = vmatpush.msra.mxu3 %v891_v13  ;;  %v922_v12 = vld [vmem:[%s3219_s11 + $0x298] sm:$0xff]  ;;  %v935_v13 = vld [vmem:[%s3219_s11 + $0x300] sm:$0xff] }
 0x17f   :  { %1056 = vmatpush.msrb.mxu0 %v916_v34  ;;  %1076 = vmatpush.msrb.mxu1 %v932_v35 }
 0x180   :  { %1026 = vmatpush.msra.mxu2 %v874_v14  ;;  %1046 = vmatpush.msra.mxu3 %v890_v15  ;;  %v951_v14 = vld [vmem:[%s3219_s11 + $0x380] sm:$0xff]  ;;  %v905_v15 = vld [vmem:[%s3219_s11 + $0x210] sm:$0xff] }
 0x181   :  { %1057 = vmatpush.msrb.mxu0 %v915_v39  ;;  %1077 = vmatpush.msrb.mxu1 %v931_v40 }
 0x182   :  { %1027 = vmatpush.msra.mxu2 %v873_v16  ;;  %1047 = vmatpush.msra.mxu3 %v889_v17  ;;  %v921_v16 = vld [vmem:[%s3219_s11 + $0x290] sm:$0xff]  ;;  %v904_v17 = vld [vmem:[%s3219_s11 + $0x208] sm:$0xff] }
 0x183   :  { %1058 = vmatpush.msrb.mxu0 %v914_v43  ;;  %1078 = vmatpush.msrb.mxu1 %v930_v44 }
 0x184   :  { %1028 = vmatpush.msra.mxu2 %v872_v18  ;;  %1048 = vmatpush.msra.mxu3 %v888_v19  ;;  %v920_v18 = vld [vmem:[%s3219_s11 + $0x288] sm:$0xff]  ;;  %v903_v19 = vld [vmem:[%s3219_s11 + $0x200] sm:$0xff] }
 0x185   :  { %1059 = vmatpush.msrb.mxu0 %v913_v47  ;;  %1079 = vmatpush.msrb.mxu1 %v929_v48 }
 0x186   :  { %1029 = vmatpush.msra.mxu2 %v871_v20  ;;  %1049 = vmatpush.msra.mxu3 %v887_v21  ;;  %v919_v20 = vld [vmem:[%s3219_s11 + $0x280] sm:$0xff] }
 0x187   :  { %1060 = vmatpush.msrb.mxu0 %v912_v51  ;;  %1080 = vmatpush.msrb.mxu1 %v928_v52  ;;  %v540_v21 = vld [vmem:[%s3218_s10] sm:$0xff]  ;;  %v968_v51 = vld [vmem:[%s3219_s11 + $0x408] sm:$0xff] }
 0x188   :  { %1094 = vmatpush.msrb.mxu2 %v950_v22  ;;  %1114 = vmatpush.msrb.mxu3 %v966_v23  ;;  %v546_v22 = vperm.slane %v540_v21, 2  ;;  %v547_v23 = vperm.slane %v540_v21, 3 }
 0x189   :  { %1061 = vmatpush.msrb.mxu0 %v911_v55  ;;  %1081 = vmatpush.msrb.mxu1 %v927_v56  ;;  %v551_v55 = vperm.slane %v540_v21, 7  ;;  %v967_v56 = vld [vmem:[%s3219_s11 + $0x400] sm:$0xff] }
 0x18a   :  { %1095 = vmatpush.msrb.mxu2 %v949_v24  ;;  %1115 = vmatpush.msrb.mxu3 %v965_v26  ;;  %v2959_v24 = vld [vmem:[#allocation2 + $0x8] sm:$0x1] }
 0x18b   :  { %1062 = vmatpush.msrb.mxu0 %v910_v59  ;;  %1082 = vmatpush.msrb.mxu1 %v926_v60  ;;  %v813_v26 = vld.sshfl [vmem:[#allocation1 + $0x10] sm:$0xff pattern:$0x73625140]  ;;  %v818_v60 = vld.sshfl [vmem:[#allocation1 + $0x38] sm:$0xff pattern:$0x73625140] }
 0x18c   :  { %1096 = vmatpush.msrb.mxu2 %v948_v27  ;;  %1116 = vmatpush.msrb.mxu3 %v964_v28  ;;  %v814_v27 = vld.sshfl [vmem:[#allocation1 + $0x18] sm:$0xff pattern:$0x73625140]  ;;  %v518_v28 = vunpack.c.l.bf16 %v2959_v24 }
 0x18d   :  { %1063 = vmatpush.msrb.mxu0 %v909_v63  ;;  %1083 = vmatpush.msrb.mxu1 %v925_v0  ;;  %v548_v63 = vperm.slane %v540_v21, 4  ;;  %v549_v0 = vperm.slane %v540_v21, 5 }
 0x18e   :  { %1097 = vmatpush.msrb.mxu2 %v947_v30  ;;  %1117 = vmatpush.msrb.mxu3 %v963_v31  ;;  %v811_v30 = vld.sshfl [vmem:[#allocation1] sm:$0xff pattern:$0x73625140]  ;;  %v812_v31 = vld.sshfl [vmem:[#allocation1 + $0x8] sm:$0xff pattern:$0x73625140] }
 0x18f   :  { %1064 = vmatpush.msrb.mxu0 %v908_v3  ;;  %1084 = vmatpush.msrb.mxu1 %v924_v4  ;;  %819 = vst [vmem:[#allocation1] ss:$4 sm:$0xff] %v518_v28  ;;  %v815_v4 = vld.sshfl [vmem:[#allocation1 + $0x20] sm:$0xff pattern:$0x73625140] }
 0x190   :  { %1098 = vmatpush.msrb.mxu2 %v946_v32  ;;  %1118 = vmatpush.msrb.mxu3 %v962_v33 }
 0x191   :  { %1065 = vmatpush.msrb.mxu0 %v907_v7  ;;  %1085 = vmatpush.msrb.mxu1 %v923_v8 }
 0x192   :  { %1099 = vmatpush.msrb.mxu2 %v945_v36  ;;  %1119 = vmatpush.msrb.mxu3 %v961_v38  ;;  %v544_v36 = vperm.slane %v540_v21, 0  ;;  %v545_v38 = vperm.slane %v540_v21, 1 }
 0x193   :  { %1066 = vmatpush.msrb.mxu0 %v906_v11  ;;  %1086 = vmatpush.msrb.mxu1 %v922_v12 }
 0x194   :  { %1100 = vmatpush.msrb.mxu2 %v944_v41  ;;  %1120 = vmatpush.msrb.mxu3 %v960_v42 }
 0x195   :  { %1067 = vmatpush.msrb.mxu0 %v905_v15  ;;  %1087 = vmatpush.msrb.mxu1 %v921_v16  ;;  %v2074_v15 = vld [vmem:[%s3218_s10 + $0x8] ss:$0 sm:$0xff] }
 0x196   :  { %1101 = vmatpush.msrb.mxu2 %v943_v45  ;;  %1121 = vmatpush.msrb.mxu3 %v959_v46 }
 0x197   :  { %1068 = vmatpush.msrb.mxu0 %v904_v17  ;;  %1088 = vmatpush.msrb.mxu1 %v920_v18  ;;  %v820_v17 = vld.sshfl [vmem:[#allocation1] sm:$0xff pattern:$0x73625140] }
 0x198   :  { %1102 = vmatpush.msrb.mxu2 %v942_v49  ;;  %1122 = vmatpush.msrb.mxu3 %v958_v50  ;;  %v970_v49 = vld [vmem:[%s3219_s11 + $0x418] sm:$0xff]  ;;  %v969_v50 = vld [vmem:[%s3219_s11 + $0x410] sm:$0xff] }
 0x199   :  { %1069 = vmatpush.msrb.mxu0 %v903_v19  ;;  %1089 = vmatpush.msrb.mxu1 %v919_v20 }
 0x19a   :  { %1103 = vmatpush.msrb.mxu2 %v941_v53  ;;  %1123 = vmatpush.msrb.mxu3 %v957_v54  ;;  %v550_v54 = vperm.slane %v540_v21, 6 }
 0x19c   :  { %1104 = vmatpush.msrb.mxu2 %v940_v57  ;;  %1124 = vmatpush.msrb.mxu3 %v956_v58  ;;  %v817_v58 = vld.sshfl [vmem:[#allocation1 + $0x30] sm:$0xff pattern:$0x73625140] }
 0x19e   :  { %1105 = vmatpush.msrb.mxu2 %v939_v61  ;;  %1125 = vmatpush.msrb.mxu3 %v955_v62 }
 0x1a0   :  { %1106 = vmatpush.msrb.mxu2 %v938_v1  ;;  %1126 = vmatpush.msrb.mxu3 %v954_v2 }
 0x1a2   :  { %1107 = vmatpush.msrb.mxu2 %v937_v5  ;;  %1127 = vmatpush.msrb.mxu3 %v953_v6  ;;  %v816_v6 = vld.sshfl [vmem:[#allocation1 + $0x28] sm:$0xff pattern:$0x73625140] }
 0x1a4   :  { %1108 = vmatpush.msrb.mxu2 %v936_v9  ;;  %1128 = vmatpush.msrb.mxu3 %v952_v10 }
 0x1a6   :  { %1109 = vmatpush.msrb.mxu2 %v935_v13  ;;  %1129 = vmatpush.msrb.mxu3 %v951_v14 }
 0x1d3   :  { %v692_v32 = vpop.f32.mrf.mxu0  ;;  %v705_v33 = vpop.f32.mrf.mxu1 }
 0x1d4   :  { %v2964_v34 = vadd.f32 %v692_v32, %v546_v22  ;;  %v2966_v35 = vadd.f32 %v705_v33, %v547_v23 }
 0x1d6   :  { %v832_v39 = vmul.f32 %v813_v26, %v2964_v34  ;;  %v833_v40 = vmul.f32 %v814_v27, %v2966_v35 }
 0x1d8   :  { %1030 = vmatmul.f32.vlgmr.msra.gmra.mxu2 %v832_v39  ;;  %1050 = vmatmul.f32.vlgmr.msra.gmra.mxu3 %v833_v40  ;;  %v666_v41 = vpop.f32.mrf.mxu2  ;;  %v679_v42 = vpop.f32.mrf.mxu3 }
 0x1d9   :  { %v2970_v43 = vadd.f32 %v666_v41, %v544_v36  ;;  %v2972_v44 = vadd.f32 %v679_v42, %v545_v38  ;;  %v2075_v42 = vld [vmem:[%s3216_s8] ss:$0 sm:$0xff] }
 0x1db   :  { %v830_v45 = vmul.f32 %v811_v30, %v2970_v43  ;;  %v831_v46 = vmul.f32 %v812_v31, %v2972_v44  ;;  %v694_v47 = vpop.f32.mrf.mxu0  ;;  %v707_v48 = vpop.f32.mrf.mxu1 }
 0x1dd   :  { %990 = vmatmul.f32.vlgmr.msra.gmra.mxu0 %v830_v45  ;;  %1010 = vmatmul.f32.vlgmr.msra.gmra.mxu1 %v831_v46 }
 0x1de   :  { %1146 = vmatpush.msra.mxu0 %v970_v49 }
 0x1e0   :  { %v668_v52 = vpop.f32.mrf.mxu2  ;;  %v681_v53 = vpop.f32.mrf.mxu3  ;;  %1147 = vmatpush.msra.mxu0 %v969_v50 }
 0x1e1   :  { %v2176_v52 = vmov 32.0  }
 0x1e2   :  { %1148 = vmatpush.msra.mxu0 %v968_v51  ;;  %2083 = vrcp.f32 %v2176_v52 }
 0x1e3   :  { %v744_v57 = vpop.f32.mrf.mxu0  ;;  %v757_v59 = vpop.f32.mrf.mxu1 }
 0x1e4   :  { %v2988_v61 = vadd.f32 %v744_v57, %v550_v54  ;;  %v2990_v62 = vadd.f32 %v757_v59, %v551_v55  ;;  %1149 = vmatpush.msra.mxu0 %v967_v56 }
 0x1e6   :  { %v836_v1 = vmul.f32 %v817_v58, %v2988_v61  ;;  %v837_v2 = vmul.f32 %v818_v60, %v2990_v62 }
 0x1e8   :  { %1110 = vmatmul.f32.vlgmr.msrb.gmra.mxu2 %v836_v1  ;;  %1130 = vmatmul.f32.vlgmr.msrb.gmra.mxu3 %v837_v2  ;;  %v718_v3 = vpop.f32.mrf.mxu2  ;;  %v731_v5 = vpop.f32.mrf.mxu3  ;;  %v2047_v2 = vld [vmem:[%s3223_s15 + $0x8] sm:$0xff] }
 0x1e9   :  { %v2994_v7 = vadd.f32 %v718_v3, %v548_v63  ;;  %v2996_v8 = vadd.f32 %v731_v5, %v549_v0  ;;  %v2084_v53 = vpop.eup %2083  ;;  %1226 = vmatpush.bf16.msra.mxu1 %v2047_v2  ;;  %v2046_v3 = vld [vmem:[%s3223_s15] sm:$0xff] }
 0x1ea   :  { %v1160_v54 = vmul.f32 32.0, %v2084_v53  ;;  %vm1164_vm6 = vweird.f32 %v2084_v53 }
 0x1eb   :  { %v834_v9 = vmul.f32 %v815_v4, %v2994_v7  ;;  %v835_v10 = vmul.f32 %v816_v6, %v2996_v8  ;;  %v746_v11 = vpop.f32.mrf.mxu0  ;;  %v759_v12 = vpop.f32.mrf.mxu1 }
 0x1ec   :  { %v1161_v55 = vsub.f32 1.0, %v1160_v54  ;;  %v2058_v54 = vld [vmem:[%s3220_s12 + $0x54] sm:$0xf] }
 0x1ed   :  { %1070 = vmatmul.f32.vlgmr.msrb.gmra.mxu0 %v834_v9  ;;  %1090 = vmatmul.f32.vlgmr.msrb.gmra.mxu1 %v835_v10 }
 0x1ee   :  { %v1162_v56 = vmul.f32 %v2084_v53, %v1161_v55  ;;  %1227 = vmatpush.bf16.msra.mxu1 %v2046_v3  ;;  %v1954_v55 = vld [vmem:[%s3220_s12 + $0x74] sm:$0xf0] }
 0x1f0   :  { %v720_v13 = vpop.f32.mrf.mxu2  ;;  %v733_v14 = vpop.f32.mrf.mxu3  ;;  %v1163_v57 = vadd.f32 %v2084_v53, %v1162_v56  ;;  %v1957_v56 = vor.u32 %v2058_v54, %v1954_v55 }
 0x1f2   :  { %v1165_v58 = vsel %vm1164_vm6, %v2084_v53, %v1163_v57  ;;  %v1908_v57 = vld [vmem:[%s3220_s12] sm:$0xf]  ;;  %1443 = vmatpush.bf16.msrb.mxu1 %v1957_v56  ;;  %v1976_v56 = vld [vmem:[%s3220_s12 + $0x68] sm:$0xf]  ;;  %vm1609_vm6 = vcmask 1044484  }
 0x1f8   :  { %v770_v16 = vpop.f32.mrf.mxu2  ;;  %v802_v23 = vpop.f32.mrf.mxu3 }
 0x1f9   :  { %v3003_v18 = vadd.f32 %v2074_v15, %v770_v16  ;;  %v803_v48 = vadd.f32 %v2075_v42, %v802_v23  ;;  %v2076_v15 = vld [vmem:[%s3221_s13] ss:$0 sm:$0xff] }
 0x1fb   :  { %v838_v19 = vmul.f32 %v820_v17, %v3003_v18  ;;  %v2077_v17 = vld [vmem:[%s3222_s14] ss:$0 sm:$0xff]  ;;  %s1643_s14 = sshll.u32 %s2178_s19, 4  ;;  %s1644_s14 = int_to_ptr.vmem [resolvable:$true] %s1643_s14 }
 0x1fd   :  { %1896 = vmatmul.msk.f32.vlgmr.msra.gmra.mxu0 %vm462_vm3, %v838_v19 }
 0x200   :  { %v772_v20 = vpop.f32.mrf.mxu2 }
 0x25a   :  { %v991_v21 = vpop.f32.mrf.mxu0  ;;  %v1011_v22 = vpop.f32.mrf.mxu1 }
 0x25b   :  { %v1012_v26 = vadd.f32 %v1011_v22, %v991_v21  ;;  %v1031_v27 = vpop.f32.mrf.mxu2  ;;  %v1051_v31 = vpop.f32.mrf.mxu3 }
 0x25d   :  { %v1032_v30 = vadd.f32 %v1031_v27, %v1012_v26  ;;  %v1233_v26 = vlaneseq }
 0x25f   :  { %v1052_v33 = vadd.f32 %v1051_v31, %v1032_v30  ;;  %v3029_v27 = vand.u32 127, %v1233_v26  ;;  %v2078_v30 = vld [vmem:[%s3224_s16] ss:$0 sm:$0xff]  ;;  %v1970_v26 = vld [vmem:[%s3220_s12 + $0x84] sm:$0xf0] }
 0x261   :  { %vm1235_vm10 = vcmp.lt.s32.totalorder %v3029_v27, 4  ;;  %vm1262_vm11 = vcmp.eq.s32.totalorder %v3029_v27, 5  ;;  %vm1267_vm12 = vcmp.eq.s32.totalorder %v3029_v27, 4 }
 0x26a   :  { %v1071_v32 = vpop.f32.mrf.mxu0  ;;  %v1091_v38 = vpop.f32.mrf.mxu1 }
 0x26b   :  { %v1072_v36 = vadd.f32 %v1071_v32, %v1052_v33  ;;  %v1111_v40 = vpop.f32.mrf.mxu2  ;;  %v1131_v45 = vpop.f32.mrf.mxu3 }
 0x26d   :  { %v1092_v39 = vadd.f32 %v1091_v38, %v1072_v36 }
 0x26f   :  { %v1112_v41 = vadd.f32 %v1111_v40, %v1092_v39 }
 0x271   :  { %v1132_v46 = vadd.f32 %v1131_v45, %v1112_v41  ;;  %v1944_v45 = vld [vmem:[%s3220_s12 + $0x48] sm:$0xf] }
 0x27a   :  { %v1151_v47 = vpop.f32.mrf.mxu0 }
 0x27b   :  { %v1152_v49 = vadd.f32 %v1151_v47, %v1132_v46  ;;  %v2061_v46 = vld [vmem:[%s3220_s12 + $0x68] sm:$0xf0] }
 0x27c   :  { %v2057_v47 = vld [vmem:[%s3220_s12 + $0x4c] sm:$0xf] }
 0x27d   :  { %v1154_v50 = vadd.f32 %v1152_v49, %v803_v48  ;;  %v1945_v48 = vor.u32 %v2061_v46, %v1944_v45  ;;  %v1946_v49 = vld [vmem:[%s3220_s12 + $0x6c] sm:$0xf0]  ;;  %v1934_v45 = vld [vmem:[%s3220_s12 + $0x3c] sm:$0xf0] }
 0x27e   :  { %v1949_v52 = vor.u32 %v2057_v47, %v1946_v49 }
 0x27f   :  { %v1156_v51 = vsel %vm1155_vm5, %v1154_v50, 0.0  ;;  %1404 = vmatpush.bf16.msra.mxu2 %v1945_v48 }
 0x280   :  { %1157 = vadd.xlane.f32.xlu0 %v1156_v51  ;;  %v2062_v51 = vld [vmem:[%s3220_s12 + $0x70] sm:$0xf0]  ;;  %1417 = vmatpush.bf16.msra.mxu3 %v1949_v52 }
 0x2f3   :  { %v1158_v59 = vpop.xlane.xlu0 %1157 }
 0x2f4   :  { %v1166_v60 = vmul.f32 %v1165_v58, %v1158_v59  ;;  %v2048_v59 = vld [vmem:[%s3220_s12 + $0x4] sm:$0xf] }
 0x2f6   :  { %v1167_v63 = vsub.f32 %v1154_v50, %v1166_v60  ;;  %v1952_v50 = vld [vmem:[%s3220_s12 + $0x50] sm:$0xf] }
 0x2f7   :  { %v1953_v53 = vor.u32 %v2062_v51, %v1952_v50  ;;  %v2079_v50 = vld [vmem:[%s3225_s17] ss:$0 sm:$0xff] }
 0x2f8   :  { %v1168_v0 = vmul.f32 %v1167_v63, %v1167_v63  ;;  %v2080_v51 = vld [vmem:[%s3226_s18] ss:$0 sm:$0xff] }
 0x2f9   :  { %1430 = vmatpush.bf16.msrb.mxu0 %v1953_v53 }
 0x2fa   :  { %v1169_v1 = vsel %vm1155_vm5, %v1168_v0, 0.0  ;;  %v1916_v0 = vld [vmem:[%s3220_s12 + $0x8] sm:$0xf]  ;;  %vm1604_vm5 = vcmask 1042434  }
 0x2fb   :  { %1170 = vadd.xlane.f32.xlu1 %v1169_v1  ;;  %v2053_v1 = vld [vmem:[%s3220_s12 + $0x28] sm:$0xf0] }
 0x2fc   :  { %v1917_v3 = vor.u32 %v2053_v1, %v1916_v0  ;;  %v2056_v0 = vld [vmem:[%s3220_s12 + $0x40] sm:$0xf0] }
 0x2fe   :  { %1431 = vmatpush.bf16.msrb.mxu0 %v1917_v3 }
 0x36e   :  { %v1171_v4 = vpop.xlane.xlu1 %1170 }
 0x36f   :  { %v1172_v5 = vmul.f32 %v1171_v4, %v1165_v58  ;;  %v2052_v58 = vld [vmem:[%s3220_s12 + $0x20] sm:$0xf0]  ;;  %v2049_v4 = vld [vmem:[%s3220_s12 + $0xc] sm:$0xf] }
 0x370   :  { %v1909_v60 = vor.u32 %v2052_v58, %v1908_v57 }
 0x371   :  { %v1173_v6 = vadd.f32 1e-05, %v1172_v5  ;;  %v1918_v5 = vld [vmem:[%s3220_s12 + $0x2c] sm:$0xf0] }
 0x372   :  { %1405 = vmatpush.bf16.msra.mxu2 %v1909_v60 }
 0x373   :  { %2085 = vrsqrt.f32 %v1173_v6  ;;  %vm1180_vm8 = vweird.f32 %v1173_v6 }
 0x379   :  { %v2086_v9 = vpop.eup %2085 }
 0x37a   :  { %v1175_v10 = vmul.f32 %v2086_v9, %v1173_v6  ;;  %vm1181_vm7 = vweird.f32 %v2086_v9  ;;  %v1921_v6 = vor.u32 %v2049_v4, %v1918_v5 }
 0x37b   :  { %vm1182_vm9 = vmor %vm1180_vm8, %vm1181_vm7  ;;  %vm1613_vm7 = vcmask 1046534   ;;  %vm1625_vm8 = vcmask 253952  }
 0x37c   :  { %v1176_v11 = vmul.f32 %v2086_v9, %v1175_v10  ;;  %1444 = vmatpush.bf16.msrb.mxu1 %v1921_v6  ;;  %v2063_v10 = vld [vmem:[%s3220_s12 + $0x78] sm:$0xf0] }
 0x37e   :  { %v1177_v12 = vmul.f32 0.5, %v1176_v11  ;;  %v1924_v11 = vld [vmem:[%s3220_s12 + $0x10] sm:$0xf] }
 0x380   :  { %v1178_v13 = vsub.f32 1.5, %v1177_v12 }
 0x382   :  { %v1179_v14 = vmul.f32 %v2086_v9, %v1178_v13  ;;  %v2054_v13 = vld [vmem:[%s3220_s12 + $0x30] sm:$0xf0] }
 0x384   :  { %v1183_v16 = vsel %vm1182_vm9, %v2086_v9, %v1179_v14  ;;  %v1960_v9 = vld [vmem:[%s3220_s12 + $0x58] sm:$0xf]  ;;  %v2059_v14 = vld [vmem:[%s3220_s12 + $0x5c] sm:$0xf] }
 0x385   :  { %v1184_v19 = vmul.f32 %v1183_v16, %v1167_v63  ;;  %v1910_v63 = vld [vmem:[%s3220_s12 + $0x24] sm:$0xf0]  ;;  %v1961_v12 = vor.u32 %v2063_v10, %v1960_v9 }
 0x386   :  { %v1913_v2 = vor.u32 %v2048_v59, %v1910_v63  ;;  %v1940_v63 = vld [vmem:[%s3220_s12 + $0x20] sm:$0xf] }
 0x387   :  { %v1189_v20 = vmul.f32 %v2076_v15, %v1184_v19  ;;  %v1962_v15 = vld [vmem:[%s3220_s12 + $0x7c] sm:$0xf0]  ;;  %v2064_v19 = vld [vmem:[%s3220_s12 + $0x80] sm:$0xf0]  ;;  %1456 = vmatpush.bf16.msrb.mxu2 %v1961_v12 }
 0x388   :  { %1418 = vmatpush.bf16.msra.mxu3 %v1913_v2  ;;  %v1965_v16 = vor.u32 %v2059_v14, %v1962_v15 }
 0x389   :  { %v1194_v21 = vadd.f32 %v2077_v17, %v1189_v20  ;;  %v1968_v17 = vld [vmem:[%s3220_s12 + $0x60] sm:$0xf]  ;;  %v2060_v20 = vld [vmem:[%s3220_s12 + $0x64] sm:$0xf] }
 0x38b   :  { %2087 = vtanh.f32 %v1194_v21  ;;  %v1925_v21 = vor.u32 %v2054_v13, %v1924_v11 }
 0x38c   :  { %1469 = vmatpush.bf16.msrb.mxu3 %v1965_v16 }
 0x38d   :  { %1457 = vmatpush.bf16.msrb.mxu2 %v1925_v21 }
 0x391   :  { %v3024_v22 = vpop.eup %2087 }
 0x392   :  { %v1196_v23 = vpack.c.bf16 %v3024_v22, %v3024_v22 }
 0x394   :  { %1905 = vmatmul.msk.bf16.vlgmr.msra.gmra.mxu1 %vm462_vm3, %v1196_v23  ;;  %v1969_v23 = vor.u32 %v2064_v19, %v1968_v17 }
 0x396   :  { %1482 = vmatpush.bf16.msra.mxu0 %v1969_v23 }
 0x411   :  { %v1229_v31 = vpop.f32.mrf.mxu1 }
 0x412   :  { %v1230_v32 = vadd.f32 %v2078_v30, %v1229_v31  ;;  %v2050_v30 = vld [vmem:[%s3220_s12 + $0x14] sm:$0xf]  ;;  %v1926_v31 = vld [vmem:[%s3220_s12 + $0x34] sm:$0xf0] }
 0x414   :  { %2089 = vtanh.f32 %v1230_v32  ;;  %v3037_v33 = vsel %vm1235_vm10, %v1230_v32, -inf }
 0x415   :  { %v1237_v36 = vsel %vm493_vm1, %v3037_v33, -inf }
 0x416   :  { %1238 = vmax.xlane.f32.xlu2 %v1237_v36  ;;  %v1929_v36 = vor.u32 %v2050_v30, %v1926_v31 }
 0x418   :  { %1470 = vmatpush.bf16.msrb.mxu3 %v1929_v36 }
 0x419   :  { %v1231_v38 = vpop.f32.mrf.mxu1 }
 0x41a   :  { %v2090_v39 = vpop.eup %2089  ;;  %v1932_v38 = vld [vmem:[%s3220_s12 + $0x18] sm:$0xf] }
 0x41b   :  { %v1263_v40 = vsel %vm1262_vm11, %v2090_v39, 0.0  ;;  %v2055_v39 = vld [vmem:[%s3220_s12 + $0x38] sm:$0xf0] }
 0x41c   :  { %v1264_v41 = vsel %vm493_vm1, %v1263_v40, 0.0  ;;  %v3044_v42 = vsel %vm1267_vm12, %v1230_v32, %v1263_v40  ;;  %v1973_v32 = vor.u32 %v2060_v20, %v1970_v26  ;;  %v2051_v40 = vld [vmem:[%s3220_s12 + $0x1c] sm:$0xf] }
 0x41d   :  { %1265 = vadd.xlane.f32.xlu1 %v1264_v41  ;;  %v1933_v41 = vor.u32 %v2055_v39, %v1932_v38  ;;  %v1937_v46 = vor.u32 %v2051_v40, %v1934_v45 }
 0x41e   :  { %1495 = vmatpush.bf16.msra.mxu1 %v1973_v32 }
 0x41f   :  { %1483 = vmatpush.bf16.msra.mxu0 %v1933_v41 }
 0x422   :  { %1496 = vmatpush.bf16.msra.mxu1 %v1937_v46 }
 0x489   :  { %v1239_v47 = vpop.xlane.xlu2 %1238 }
 0x48a   :  { %v1240_v48 = vsub.f32 %v3037_v33, %v1239_v47  ;;  %v2065_v33 = vld [vmem:[%s3220_s12 + $0x88] sm:$0xf0]  ;;  %s2177_s12 = smov [#allocation5]  }
 0x48b   :  { %v1977_v60 = vor.u32 %v2065_v33, %v1976_v56  ;;  %s1632_s15 = sshll.u32 %s2177_s12, 4  ;;  %s1633_s15 = int_to_ptr.vmem [resolvable:$true] %s1632_s15 }
 0x48c   :  { %v1241_v49 = vmul.f32 1.442695, %v1240_v48 }
 0x48e   :  { %2091 = vpow2.f32 %v1241_v49 }
 0x490   :  { %v1266_v52 = vpop.xlane.xlu1 %1265 }
 0x491   :  { %v1275_v53 = vmul.f32 %v2079_v50, %v1266_v52 }
 0x493   :  { %v1280_v54 = vadd.f32 %v2080_v51, %v1275_v53 }
 0x494   :  { %v2092_v55 = vpop.eup %2091 }
 0x495   :  { %v1281_v57 = vmul.f32 %v3024_v22, %v1280_v54  ;;  %v1243_v58 = vsel %vm493_vm1, %v2092_v55, 0.0  ;;  %v1941_v22 = vor.u32 %v2056_v0, %v1940_v63 }
 0x496   :  { %1244 = vadd.xlane.f32.xlu2 %v1243_v58 }
 0x497   :  { %v1282_v59 = vpack.c.bf16 %v1281_v57, %v1281_v57 }
 0x499   :  { %1978 = vmatmul.msk.bf16.vlgmr.msra.gmra.mxu2 %vm462_vm3, %v1282_v59  ;;  %1979 = vmatmul.msk.bf16.vlgmr.msra.gmra.mxu3 %vm462_vm3, %v1282_v59 }
 0x49a   :  { %1980 = vmatmul.msk.bf16.vlgmr.msrb.gmra.mxu0 %vm462_vm3, %v1282_v59  ;;  %1981 = vmatmul.msk.bf16.vlgmr.msrb.gmra.mxu1 %vm462_vm3, %v1282_v59 }
 0x49b   :  { %1508 = vmatpush.bf16.msra.mxu2 %v1977_v60 }
 0x49f   :  { %1509 = vmatpush.bf16.msra.mxu2 %v1941_v22 }
 0x4a9   :  { %1982 = vmatmul.msk.bf16.vlgmr.msrb.gmra.mxu2 %vm462_vm3, %v1282_v59  ;;  %1983 = vmatmul.msk.bf16.vlgmr.msrb.gmra.mxu3 %vm462_vm3, %v1282_v59 }
 0x4aa   :  { %1984 = vmatmul.msk.bf16.vlgmr.msra.gmra.mxu0 %vm462_vm3, %v1282_v59  ;;  %1985 = vmatmul.msk.bf16.vlgmr.msra.gmra.mxu1 %vm462_vm3, %v1282_v59 }
 0x4b9   :  { %1986 = vmatmul.msk.bf16.vlgmr.msra.gmra.mxu2 %vm462_vm3, %v1282_v59  ;;  %vm1541_vm3 = vcmask 1043456  }
 0x509   :  { %v1245_v1 = vpop.xlane.xlu2 %1244 }
 0x50a   :  { %2093 = vrcp.f32 %v1245_v1  ;;  %v1257_v5 = vand.u32 2147483648, %v1245_v1  ;;  %v1255_v9 = vand.u32 2147483647, %v1245_v1  ;;  %vm1251_vm14 = vweird.f32 %v1245_v1 }
 0x50c   :  { %v1258_v13 = vor.u32 1.1754944e-38, %v1257_v5  ;;  %vm1256_vm0 = vcmp.eq.f32.partialorder %v1255_v9, 8.507059e+37 }
 0x510   :  { %v2094_v2 = vpop.eup %2093 }
 0x511   :  { %v1247_v3 = vmul.f32 %v2094_v2, %v1245_v1  ;;  %vm1252_vm13 = vweird.f32 %v2094_v2 }
 0x512   :  { %vm1253_vm15 = vmor %vm1251_vm14, %vm1252_vm13 }
 0x513   :  { %v1248_v4 = vsub.f32 1.0, %v1247_v3 }
 0x515   :  { %v1249_v6 = vmul.f32 %v2094_v2, %v1248_v4 }
 0x517   :  { %v1250_v10 = vadd.f32 %v2094_v2, %v1249_v6  ;;  %v1433_v11 = vpop.f32.mrf.mxu0  ;;  %v1446_v12 = vpop.f32.mrf.mxu1 }
 0x518   :  { %v1517_v15 = vmul.f32 %v1433_v11, %v2964_v34  ;;  %v1518_v16 = vmul.f32 %v1446_v12, %v2966_v35 }
 0x519   :  { %v1254_v14 = vsel %vm1253_vm15, %v2094_v2, %v1250_v10 }
 0x51a   :  { %v1259_v17 = vsel %vm1256_vm0, %v1258_v13, %v1254_v14  ;;  %v1533_v23 = vrot.slane %v1517_v15, 4  ;;  %v1534_v26 = vrot.slane %v1518_v16, 2 }
 0x51b   :  { %v1260_v19 = vmul.f32 %v2092_v55, %v1259_v17 }
 0x51c   :  { %v1407_v20 = vpop.f32.mrf.mxu2  ;;  %v1420_v21 = vpop.f32.mrf.mxu3  ;;  %v1540_v38 = vsel %vm1539_vm2, %v1533_v23, %v1534_v26 }
 0x51d   :  { %v1516_v30 = vmul.f32 %v1420_v21, %v2972_v44  ;;  %v1269_v34 = vsel %vm1235_vm10, %v1260_v19, %v3044_v42  ;;  %v1515_v35 = vmul.f32 %v1407_v20, %v2970_v43 }
 0x51e   :  { %1270 = vst [vmem:[#allocation5] sm:$0x3] %v1269_v34 }
 0x51f   :  { %v1532_v31 = vrot.slane %v1516_v30, 6  ;;  %v1435_v32 = vpop.f32.mrf.mxu0  ;;  %v1448_v36 = vpop.f32.mrf.mxu1  ;;  %1637 = dma.vmem_to_hbm [thread:$0]  %s1633_s15, 32, %s1635_s22, [#allocation4]  }
 0x521   :  { %v1538_v39 = vsel %vm493_vm1, %v1515_v35, %v1532_v31 }
 0x522   :  { %v1542_v40 = vsel %vm1541_vm3, %v1538_v39, %v1540_v38 }
 0x523   :  { %v1548_v44 = vadd.f32 %v1542_v40, %v516_v37 }
 0x524   :  { %v1409_v27 = vpop.f32.mrf.mxu2  ;;  %v1422_v42 = vpop.f32.mrf.mxu3 }
 0x525   :  { %v1987_v41 = vclamps-f32 %v1548_v44, 2.0 }
 0x527   :  { %1560 = vst [vmem:[#allocation1] ss:$4 sm:$0xff] %v1987_v41  ;;  %v1485_v45 = vpop.f32.mrf.mxu0  ;;  %v1498_v43 = vpop.f32.mrf.mxu1 }
 0x528   :  { %v1521_v46 = vmul.f32 %v1485_v45, %v2988_v61  ;;  %v1522_v47 = vmul.f32 %v1498_v43, %v2990_v62 }
 0x52a   :  { %v1536_v50 = vrot.slane %v1521_v46, 4  ;;  %v1537_v51 = vrot.slane %v1522_v47, 2 }
 0x52c   :  { %v1459_v48 = vpop.f32.mrf.mxu2  ;;  %v1472_v49 = vpop.f32.mrf.mxu3  ;;  %v1544_v56 = vsel %vm1539_vm2, %v1536_v50, %v1537_v51 }
 0x52d   :  { %v1520_v52 = vmul.f32 %v1472_v49, %v2996_v8  ;;  %v1519_v53 = vmul.f32 %v1459_v48, %v2994_v7 }
 0x52e   :  { %v1563_v59 = vld.sshfl [vmem:[#allocation1] sm:$0xff pattern:$0x73625140]  ;;  %v1564_v63 = vld.sshfl [vmem:[#allocation1 + $0x8] sm:$0xff pattern:$0x73625140] }
 0x52f   :  { %v1535_v54 = vrot.slane %v1520_v52, 6  ;;  %v1487_v37 = vpop.f32.mrf.mxu0  ;;  %v1500_v55 = vpop.f32.mrf.mxu1  ;;  %v1565_v8 = vld.sshfl [vmem:[#allocation1 + $0x10] sm:$0xff pattern:$0x73625140]  ;;  %v1582_v7 = vpack.c.bf16 %v1564_v63, %v1563_v59 }
 0x530   :  { %v1566_v0 = vld.sshfl [vmem:[#allocation1 + $0x18] sm:$0xff pattern:$0x73625140] }
 0x531   :  { %v1543_v33 = vsel %vm493_vm1, %v1519_v53, %v1535_v54  ;;  %v1583_v22 = vpack.c.bf16 %v1566_v0, %v1565_v8  ;;  %v1592_v3 = vrot.slane %v1582_v7, 3 }
 0x532   :  { %v1545_v57 = vsel %vm1541_vm3, %v1543_v33, %v1544_v56 }
 0x533   :  { %v1549_v61 = vadd.f32 %v1545_v57, %v517_v29  ;;  %v1593_v4 = vrot.slane %v1583_v22, 6  ;;  %v1594_v5 = vrot.slane %v1583_v22, 1 }
 0x534   :  { %v1461_v62 = vpop.f32.mrf.mxu2  ;;  %v1474_v58 = vpop.f32.mrf.mxu3 }
 0x535   :  { %v1988_v60 = vclamps-f32 %v1549_v61, 2.0  ;;  %v1607_v19 = vsel %vm1604_vm5, %v1593_v4, %v1594_v5 }
 0x537   :  { %1562 = vst [vmem:[#allocation1 + $0x20] ss:$4 sm:$0xff] %v1988_v60 }
 0x53c   :  { %v1511_v1 = vpop.f32.mrf.mxu2 }
 0x53d   :  { %v1523_v2 = vmul.f32 %v1511_v1, %v3003_v18  ;;  %v1603_v18 = vsel %vm1600_vm4, %v1582_v7, %v1592_v3 }
 0x53e   :  { %v1567_v25 = vld.sshfl [vmem:[#allocation1 + $0x20] sm:$0xff pattern:$0x73625140]  ;;  %v1568_v29 = vld.sshfl [vmem:[#allocation1 + $0x28] sm:$0xff pattern:$0x73625140] }
 0x53f   :  { %v1550_v6 = vadd.f32 %v1523_v2, %v518_v28  ;;  %v1569_v9 = vld.sshfl [vmem:[#allocation1 + $0x30] sm:$0xff pattern:$0x73625140]  ;;  %v1570_v10 = vld.sshfl [vmem:[#allocation1 + $0x38] sm:$0xff pattern:$0x73625140]  ;;  %v1584_v11 = vpack.c.bf16 %v1568_v29, %v1567_v25  ;;  %v1608_v28 = vsel %vm493_vm1, %v1603_v18, %v1607_v19 }
 0x540   :  { %v1585_v12 = vpack.c.bf16 %v1570_v10, %v1569_v9 }
 0x541   :  { %v1989_v13 = vclamps-f32 %v1550_v6, 2.0  ;;  %v1595_v14 = vrot.slane %v1584_v11, 4  ;;  %v1596_v15 = vrot.slane %v1584_v11, 7 }
 0x542   :  { %v1597_v16 = vrot.slane %v1585_v12, 2  ;;  %v1598_v17 = vrot.slane %v1585_v12, 5 }
 0x543   :  { %1571 = vst [vmem:[#allocation1] ss:$4 sm:$0xff] %v1989_v13  ;;  %v1612_v20 = vsel %vm1609_vm6, %v1595_v14, %v1596_v15 }
 0x544   :  { %v1513_v21 = vpop.f32.mrf.mxu2  ;;  %v1616_v24 = vsel %vm1613_vm7, %v1597_v16, %v1598_v17 }
 0x545   :  { %v1617_v23 = vsel %vm1539_vm2, %v1612_v20, %v1616_v24 }
 0x546   :  { %v1618_v26 = vsel %vm1541_vm3, %v1608_v28, %v1617_v23 }
 0x547   :  { %1624 = vst [vmem:[#allocation6] sm:$0xff] %v1618_v26 }
 0x54a   :  { %v1572_v30 = vld.sshfl [vmem:[#allocation1] sm:$0xff pattern:$0x73625140] }
 0x54b   :  { %v1586_v34 = vpack.c.bf16 %v1572_v30, %v1572_v30 }
 0x54d   :  { %v1599_v35 = vrot.slane %v1586_v34, 3 }
 0x54f   :  { %v1621_v31 = vsel %vm1600_vm4, %v1586_v34, %v1599_v35 }
 0x550   :  { %1626 = vst.msk [vmem:[#allocation6 + $0x8] sm:$0x1] %vm1625_vm8, %v1621_v31 }
 0x551   :  { %1648 = dma.vmem_to_hbm [thread:$0]  %s1644_s14, 144, %s1646_s24, [#allocation7]  }
 0x552   :  { %2169 = dma.done.wait [#allocation4], 32  }
 0x553   :  { %2170 = vsyncadd [#allocation4], 4294967264 }
 0x554   :  { %2171 = dma.done.wait [#allocation7], 144  }
 0x555   :  { %2172 = vsyncadd [#allocation7], 4294967152 }
 0x556   :  { %1657 = vsyncpa [#allocation3], 1 }
 0x557   :  { %1658 = vsyncpa [#allocation4], 1 }
 0x558   :  { %1659 = vsyncpa [#allocation7], 1 }

</bundles_post_ra>
